<compile_context>
chip_gen: v7x
topology: tpu7x:2x2x1
jax: 0.10.0
libtpu: 0.0.40
codegen_flags: <defaults>
</compile_context>

<pallas_src>
import jax
import jax.numpy as jnp
from jax.experimental import pallas as pl
from jax.experimental.pallas import tpu as pltpu

OUT_PAD = 128  # pad head output lane dim to 128 for lane-dense stores


# ----------------------------------------------------------------------------
# Fused kernel: all encoder layers + pooler/tanh/dense/sigmoid head.
# grid = (n_layers,); activation resident in VMEM scratch across layers.
# ----------------------------------------------------------------------------
def fused_bert_kernel(x_ref,                                     # (B, S, H) f32
                      wqkv_ref, bqkv_ref, wo_ref, bo_ref,        # stacked per layer
                      ln1g_ref, ln1b_ref, w1_ref, b1_ref,
                      w2_ref, b2_ref, ln2g_ref, ln2b_ref,
                      wp_ref, bp_ref, wd_ref, bd_ref,            # head (constant)
                      out_ref,                                   # (B, OUT_PAD) f32
                      h_ref):                                    # VMEM (B*S, H) f32
    layer = pl.program_id(0)
    n_layers = pl.num_programs(0)

    B, S, H = x_ref.shape
    M = B * S

    # -- initialize resident activation from the embedding output (layer 0) --
    @pl.when(layer == 0)
    def _():
        h_ref[...] = x_ref[...].reshape(M, H)

    h = h_ref[...]                                  # (M, H) f32
    h_bf = h.astype(jnp.bfloat16)

    # ---- self-attention: fused QKV projection on flattened (B*S, H) ----
    qkv = jnp.dot(h_bf, wqkv_ref[0],
                  preferred_element_type=jnp.float32) + bqkv_ref[0]   # (M, 3H) f32
    q = qkv[:, :H].reshape(B, S, H)
    k = qkv[:, H:2 * H].reshape(B, S, H)
    v = qkv[:, 2 * H:].reshape(B, S, H)

    scale = 1.0 / (float(H) ** 0.5)
    # batched scores, contracting last dims (no explicit k transpose)
    scores = jnp.einsum('bqd,bkd->bqk',
                        q.astype(jnp.bfloat16), k.astype(jnp.bfloat16),
                        preferred_element_type=jnp.float32) * scale    # (B, S, S)
    m = jnp.max(scores, axis=-1, keepdims=True)
    p = jnp.exp(scores - m)
    denom = jnp.sum(p, axis=-1, keepdims=True)
    p = p * pl.reciprocal(denom, approx=True)                          # EUP recip

    ctx = jnp.einsum('bqk,bkd->bqd',
                     p.astype(jnp.bfloat16), v.astype(jnp.bfloat16),
                     preferred_element_type=jnp.float32)               # (B, S, H)
    ctx = ctx.reshape(M, H)
    attn = jnp.dot(ctx.astype(jnp.bfloat16), wo_ref[0],
                   preferred_element_type=jnp.float32) + bo_ref[0]     # (M, H)

    def layer_norm(a, g, b):                        # f32 VPU math
        mu = jnp.mean(a, axis=-1, keepdims=True)
        var = jnp.mean((a - mu) ** 2, axis=-1, keepdims=True)
        return (a - mu) * jax.lax.rsqrt(var + 1e-12) * g + b

    h1 = layer_norm(h + attn, ln1g_ref[0], ln1b_ref[0])                # (M, H)

    # ---- feed-forward (flattened M dimension) ----
    ff = jnp.dot(h1.astype(jnp.bfloat16), w1_ref[0],
                 preferred_element_type=jnp.float32) + b1_ref[0]       # (M, I)
    # TODO(synk): HF BERT default is exact erf GELU; tanh approximation used here.
    ff = jax.nn.gelu(ff, approximate=True)
    ff = jnp.dot(ff.astype(jnp.bfloat16), w2_ref[0],
                 preferred_element_type=jnp.float32) + b2_ref[0]       # (M, H)

    h2 = layer_norm(h1 + ff, ln2g_ref[0], ln2b_ref[0])                 # (M, H)
    h_ref[...] = h2

    # ---- fused head on the last layer step ----
    @pl.when(layer == n_layers - 1)
    def _():
        h0 = h2.reshape(B, S, H)[:, 0, :]                              # (B, H) CLS
        pooled = jnp.tanh(
            jnp.dot(h0.astype(jnp.bfloat16), wp_ref[...],
                    preferred_element_type=jnp.float32) + bp_ref[...])
        # dropout: identity at inference time
        pooled = jnp.tanh(pooled)                                      # self.tanh(...)
        out = jnp.dot(pooled.astype(jnp.bfloat16), wd_ref[...],
                      preferred_element_type=jnp.float32) + bd_ref[...]
        out_ref[...] = jax.nn.sigmoid(out)                             # (B, OUT_PAD)


def fused_encoder_and_head(x, params):
    """x: (B, S, H) f32 embedding output. Returns (B, OUT_PAD) f32 (sliced outside)."""
    B, S, H = x.shape
    L = params['wqkv'].shape[0]
    I = params['w1'].shape[-1]

    def stacked(shape):
        # per-layer tensor: stream layer `l`'s slice each grid step
        return pl.BlockSpec((1,) + shape, lambda l, _s=shape: (l,) + (0,) * len(_s))

    def const(shape):
        # layer-invariant tensor: constant block index (loaded once, stays resident)
        return pl.BlockSpec(shape, lambda l, _n=len(shape): (0,) * _n)

    args_and_specs = [
        (x,                  pl.BlockSpec((B, S, H), lambda l: (0, 0, 0))),
        (params['wqkv'],     stacked((H, 3 * H))),
        (params['bqkv'],     stacked((1, 3 * H))),
        (params['wo'],       stacked((H, H))),
        (params['bo'],       stacked((1, H))),
        (params['ln1g'],     stacked((1, H))),
        (params['ln1b'],     stacked((1, H))),
        (params['w1'],       stacked((H, I))),
        (params['b1'],       stacked((1, I))),
        (params['w2'],       stacked((I, H))),
        (params['b2'],       stacked((1, H))),
        (params['ln2g'],     stacked((1, H))),
        (params['ln2b'],     stacked((1, H))),
        (params['w_pool'],   const((H, H))),
        (params['b_pool'],   const((1, H))),
        (params['wd_pad'],   const((H, OUT_PAD))),
        (params['bd_pad'],   const((1, OUT_PAD))),
    ]
    args = [a for a, _ in args_and_specs]
    in_specs = [s for _, s in args_and_specs]

    return pl.pallas_call(
        fused_bert_kernel,
        out_shape=jax.ShapeDtypeStruct((B, OUT_PAD), jnp.float32),
        grid=(L,),
        in_specs=in_specs,
        out_specs=pl.BlockSpec((B, OUT_PAD), lambda l: (0, 0)),
        scratch_shapes=[pltpu.VMEM((B * S, H), jnp.float32)],
        compiler_params=pltpu.CompilerParams(
            dimension_semantics=("arbitrary",),
            vmem_limit_bytes=32 * 1024 * 1024),
    )(*args)


# ----------------------------------------------------------------------------
# Parameter construction + full forward
# ----------------------------------------------------------------------------
def make_params(key, vocab, S, H, I, O, n_layers):
    def nrm(k, shape, scale=0.02, dtype=jnp.float32):
        return (scale * jax.random.normal(k, shape, jnp.float32)).astype(dtype)

    keys = iter(jax.random.split(key, 8))
    bf = jnp.bfloat16

    wd = nrm(next(keys), (H, O))
    wd_pad = jnp.zeros((H, OUT_PAD), jnp.float32).at[:, :O].set(wd).astype(bf)

    params = {
        # embeddings (plain-JAX glue)
        'tok_emb': nrm(next(keys), (vocab, H)),
        'pos_emb': nrm(next(keys), (S, H)),
        'emb_ln_g': jnp.ones((H,), jnp.float32),
        'emb_ln_b': jnp.zeros((H,), jnp.float32),
        # encoder layers, stacked along a leading layer axis; weights bf16 (MXU),
        # biases / LN params f32 (VPU math stays f32)
        'wqkv': nrm(next(keys), (n_layers, H, 3 * H), dtype=bf),
        'bqkv': jnp.zeros((n_layers, 1, 3 * H), jnp.float32),
        'wo':   nrm(next(keys), (n_layers, H, H), dtype=bf),
        'bo':   jnp.zeros((n_layers, 1, H), jnp.float32),
        'ln1g': jnp.ones((n_layers, 1, H), jnp.float32),
        'ln1b': jnp.zeros((n_layers, 1, H), jnp.float32),
        'w1':   nrm(next(keys), (n_layers, H, I), dtype=bf),
        'b1':   jnp.zeros((n_layers, 1, I), jnp.float32),
        'w2':   nrm(next(keys), (n_layers, I, H), dtype=bf),
        'b2':   jnp.zeros((n_layers, 1, H), jnp.float32),
        'ln2g': jnp.ones((n_layers, 1, H), jnp.float32),
        'ln2b': jnp.zeros((n_layers, 1, H), jnp.float32),
        # head: BertPooler dense + final dense (padded to OUT_PAD lanes)
        'w_pool': nrm(next(keys), (H, H), dtype=bf),
        'b_pool': jnp.zeros((1, H), jnp.float32),
        'wd_pad': wd_pad,
        'bd_pad': jnp.zeros((1, OUT_PAD), jnp.float32),
        'out_dim': O,
    }
    return params


def bert_mlp_forward(text_indices, params):
    # --- glue: embedding lookup + embedding LayerNorm (plain JAX; gather) ---
    tok = params['tok_emb'][text_indices]                   # (B, S, H)
    pos = params['pos_emb'][None, :, :]
    h = tok + pos
    mu = jnp.mean(h, axis=-1, keepdims=True)
    var = jnp.mean((h - mu) ** 2, axis=-1, keepdims=True)
    h = (h - mu) * jax.lax.rsqrt(var + 1e-12) * params['emb_ln_g'] + params['emb_ln_b']

    # --- fused encoder stack + pooler + tanh + dense + sigmoid (Pallas) ---
    out_padded = fused_encoder_and_head(h, params)          # (B, OUT_PAD)
    return out_padded[:, :params['out_dim']]                # (B, O)


if __name__ == "__main__":
    B, S, H, I, O = 2, 8, 32, 64, 1
    VOCAB = 100
    N_LAYERS = 2

    key = jax.random.PRNGKey(0)
    k_ids, k_params = jax.random.split(key)
    text_indices = jax.random.randint(k_ids, (B, S), 0, VOCAB, dtype=jnp.int32)
    params = make_params(k_params, VOCAB, S, H, I, O, N_LAYERS)

    out = bert_mlp_forward(text_indices, params)
    out = jax.block_until_ready(out)

    assert out.shape == (B, O), out.shape
    assert bool(jnp.all(jnp.isfinite(out)))
    assert bool(jnp.all((out >= 0.0) & (out <= 1.0)))       # sigmoid range
    print("KERNEL_OK")
</pallas_src>

<mosaic_0001>
module attributes {stable_mosaic.version = 11 : i64} {
  func.func @fused_bert_kernel(%arg0: i32, %arg1: memref<2x8x32xf32, #tpu.memory_space<vmem>>, %arg2: memref<1x32x96xbf16, #tpu.memory_space<vmem>>, %arg3: memref<1x1x96xf32, #tpu.memory_space<vmem>>, %arg4: memref<1x32x32xbf16, #tpu.memory_space<vmem>>, %arg5: memref<1x1x32xf32, #tpu.memory_space<vmem>>, %arg6: memref<1x1x32xf32, #tpu.memory_space<vmem>>, %arg7: memref<1x1x32xf32, #tpu.memory_space<vmem>>, %arg8: memref<1x32x64xbf16, #tpu.memory_space<vmem>>, %arg9: memref<1x1x64xf32, #tpu.memory_space<vmem>>, %arg10: memref<1x64x32xbf16, #tpu.memory_space<vmem>>, %arg11: memref<1x1x32xf32, #tpu.memory_space<vmem>>, %arg12: memref<1x1x32xf32, #tpu.memory_space<vmem>>, %arg13: memref<1x1x32xf32, #tpu.memory_space<vmem>>, %arg14: memref<32x32xbf16, #tpu.memory_space<vmem>>, %arg15: memref<1x32xf32, #tpu.memory_space<vmem>>, %arg16: memref<32x128xbf16, #tpu.memory_space<vmem>>, %arg17: memref<1x128xf32, #tpu.memory_space<vmem>>, %arg18: memref<2x128xf32, #tpu.memory_space<vmem>>, %arg19: memref<16x32xf32, #tpu.memory_space<vmem>>) attributes {dimension_semantics = [#tpu.dimension_semantics<arbitrary>], iteration_bounds = array<i64: 2>, scalar_prefetch = 0 : i64, scratch_operands = 1 : i64, tpu.core_type = #tpu.core_type<tc>, window_params = [{pipeline_mode = #tpu.pipeline_mode<synchronous>, transform_indices = @transform_0, window_bounds = array<i64: 2, 8, 32>}, {transform_indices = @transform_1, window_bounds = array<i64: 1, 32, 96>}, {transform_indices = @transform_2, window_bounds = array<i64: 1, 1, 96>}, {transform_indices = @transform_3, window_bounds = array<i64: 1, 32, 32>}, {transform_indices = @transform_4, window_bounds = array<i64: 1, 1, 32>}, {transform_indices = @transform_5, window_bounds = array<i64: 1, 1, 32>}, {transform_indices = @transform_6, window_bounds = array<i64: 1, 1, 32>}, {transform_indices = @transform_7, window_bounds = array<i64: 1, 32, 64>}, {transform_indices = @transform_8, window_bounds = array<i64: 1, 1, 64>}, {transform_indices = @transform_9, window_bounds = array<i64: 1, 64, 32>}, {transform_indices = @transform_10, window_bounds = array<i64: 1, 1, 32>}, {transform_indices = @transform_11, window_bounds = array<i64: 1, 1, 32>}, {transform_indices = @transform_12, window_bounds = array<i64: 1, 1, 32>}, {pipeline_mode = #tpu.pipeline_mode<synchronous>, transform_indices = @transform_13, window_bounds = array<i64: 32, 32>}, {pipeline_mode = #tpu.pipeline_mode<synchronous>, transform_indices = @transform_14, window_bounds = array<i64: 1, 32>}, {pipeline_mode = #tpu.pipeline_mode<synchronous>, transform_indices = @transform_15, window_bounds = array<i64: 32, 128>}, {pipeline_mode = #tpu.pipeline_mode<synchronous>, transform_indices = @transform_16, window_bounds = array<i64: 1, 128>}, {pipeline_mode = #tpu.pipeline_mode<synchronous>, transform_indices = @transform_17, window_bounds = array<i64: 2, 128>}]} {
    %c0_i32 = arith.constant 0 : i32
    %0 = arith.cmpi eq, %arg0, %c0_i32 : i32
    %1 = arith.extui %0 : i1 to i32
    %c0_i32_0 = arith.constant 0 : i32
    %2 = arith.cmpi ne, %1, %c0_i32_0 : i32
    scf.if %2 {
      %c0_63 = arith.constant 0 : index
      %c0_64 = arith.constant 0 : index
      %c0_65 = arith.constant 0 : index
      %132 = vector.load %arg1[%c0_63, %c0_64, %c0_65] : memref<2x8x32xf32, #tpu.memory_space<vmem>>, vector<2x8x32xf32>
      %133 = vector.shape_cast %132 : vector<2x8x32xf32> to vector<16x32xf32>
      %c0_66 = arith.constant 0 : index
      %c0_67 = arith.constant 0 : index
      %134 = vector.load %arg19[%c0_66, %c0_67] : memref<16x32xf32, #tpu.memory_space<vmem>>, vector<16x32xf32>
      tpu.vector_store %arg19[%c0_66, %c0_67], %133 {strides = array<i32>} : memref<16x32xf32, #tpu.memory_space<vmem>>, vector<16x32xf32>,
    } else {
    }
    %c0 = arith.constant 0 : index
    %c0_1 = arith.constant 0 : index
    %3 = vector.load %arg19[%c0, %c0_1] : memref<16x32xf32, #tpu.memory_space<vmem>>, vector<16x32xf32>
    %4 = arith.truncf %3 : vector<16x32xf32> to vector<16x32xbf16>
    %c0_2 = arith.constant 0 : index
    %c0_3 = arith.constant 0 : index
    %c0_4 = arith.constant 0 : index
    %5 = vector.load %arg2[%c0_2, %c0_3, %c0_4] : memref<1x32x96xbf16, #tpu.memory_space<vmem>>, vector<1x32x96xbf16>
    %6 = vector.shape_cast %5 : vector<1x32x96xbf16> to vector<32x96xbf16>
    %cst = arith.constant dense<0.000000e+00> : vector<16x96xf32>
    %7 = tpu.matmul %4, %6, %cst {dimension_numbers = #tpu.dot_dimension_numbers<[1], [0], [0], [1], [0, 0, 1, 1], [], []>} : vector<16x32xbf16>, vector<32x96xbf16>, vector<16x96xf32> -> vector<16x96xf32>
    %c0_5 = arith.constant 0 : index
    %c0_6 = arith.constant 0 : index
    %c0_7 = arith.constant 0 : index
    %8 = vector.load %arg3[%c0_5, %c0_6, %c0_7] : memref<1x1x96xf32, #tpu.memory_space<vmem>>, vector<1x1x96xf32>
    %9 = vector.shape_cast %8 : vector<1x1x96xf32> to vector<1x96xf32>
    %10 = vector.broadcast %9 : vector<1x96xf32> to vector<16x96xf32>
    %11 = arith.addf %7, %10 : vector<16x96xf32>
    %12 = vector.extract_strided_slice %11 {offsets = [0, 0], sizes = [16, 32], strides = [1, 1]} : vector<16x96xf32> to vector<16x32xf32>
    %13 = vector.shape_cast %12 : vector<16x32xf32> to vector<2x8x32xf32>
    %14 = vector.extract_strided_slice %11 {offsets = [0, 32], sizes = [16, 32], strides = [1, 1]} : vector<16x96xf32> to vector<16x32xf32>
    %15 = vector.shape_cast %14 : vector<16x32xf32> to vector<2x8x32xf32>
    %16 = vector.extract_strided_slice %11 {offsets = [0, 64], sizes = [16, 32], strides = [1, 1]} : vector<16x96xf32> to vector<16x32xf32>
    %17 = vector.shape_cast %16 : vector<16x32xf32> to vector<2x8x32xf32>
    %18 = arith.truncf %13 : vector<2x8x32xf32> to vector<2x8x32xbf16>
    %19 = arith.truncf %15 : vector<2x8x32xf32> to vector<2x8x32xbf16>
    "tpu.trace_start"() <{level = 10 : i32, message = "bqd,bkd->bqk"}> : () -> ()
    %cst_8 = arith.constant dense<0.000000e+00> : vector<2x8x8xf32>
    %20 = tpu.matmul %18, %19, %cst_8 {dimension_numbers = #tpu.dot_dimension_numbers<[2], [2], [1], [1], [0, 0, 0, 1, 1, 1], [0], [0]>} : vector<2x8x32xbf16>, vector<2x8x32xbf16>, vector<2x8x8xf32> -> vector<2x8x8xf32>
    "tpu.trace_stop"() : () -> ()
    %cst_9 = arith.constant 0.176776692 : f32
    %21 = vector.broadcast %cst_9 : f32 to vector<2x8x8xf32>
    %22 = arith.mulf %20, %21 : vector<2x8x8xf32>
    %cst_10 = arith.constant dense<0xFF800000> : vector<2x8xf32>
    %23 = vector.multi_reduction <maximumf>, %22, %cst_10 [2] : vector<2x8x8xf32> to vector<2x8xf32>
    %24 = vector.shape_cast %23 : vector<2x8xf32> to vector<2x8x1xf32>
    %25 = vector.broadcast %24 : vector<2x8x1xf32> to vector<2x8x8xf32>
    %26 = arith.subf %22, %25 : vector<2x8x8xf32>
    %27 = math.exp %26 : vector<2x8x8xf32>
    %cst_11 = arith.constant dense<0.000000e+00> : vector<2x8xf32>
    %28 = vector.multi_reduction <add>, %27, %cst_11 [2] : vector<2x8x8xf32> to vector<2x8xf32>
    %29 = vector.shape_cast %28 : vector<2x8xf32> to vector<2x8x1xf32>
    %30 = tpu.reciprocal %29 {approx = true} : vector<2x8x1xf32> -> vector<2x8x1xf32>
    %31 = vector.broadcast %30 : vector<2x8x1xf32> to vector<2x8x8xf32>
    %32 = arith.mulf %27, %31 : vector<2x8x8xf32>
    %33 = arith.truncf %32 : vector<2x8x8xf32> to vector<2x8x8xbf16>
    %34 = arith.truncf %17 : vector<2x8x32xf32> to vector<2x8x32xbf16>
    "tpu.trace_start"() <{level = 10 : i32, message = "bqk,bkd->bqd"}> : () -> ()
    %cst_12 = arith.constant dense<0.000000e+00> : vector<2x8x32xf32>
    %35 = tpu.matmul %33, %34, %cst_12 {dimension_numbers = #tpu.dot_dimension_numbers<[2], [1], [1], [2], [0, 0, 0, 1, 1, 2], [0], [0]>} : vector<2x8x8xbf16>, vector<2x8x32xbf16>, vector<2x8x32xf32> -> vector<2x8x32xf32>
    "tpu.trace_stop"() : () -> ()
    %36 = vector.shape_cast %35 : vector<2x8x32xf32> to vector<16x32xf32>
    %37 = arith.truncf %36 : vector<16x32xf32> to vector<16x32xbf16>
    %c0_13 = arith.constant 0 : index
    %c0_14 = arith.constant 0 : index
    %c0_15 = arith.constant 0 : index
    %38 = vector.load %arg4[%c0_13, %c0_14, %c0_15] : memref<1x32x32xbf16, #tpu.memory_space<vmem>>, vector<1x32x32xbf16>
    %39 = vector.shape_cast %38 : vector<1x32x32xbf16> to vector<32x32xbf16>
    %cst_16 = arith.constant dense<0.000000e+00> : vector<16x32xf32>
    %40 = tpu.matmul %37, %39, %cst_16 {dimension_numbers = #tpu.dot_dimension_numbers<[1], [0], [0], [1], [0, 0, 1, 1], [], []>} : vector<16x32xbf16>, vector<32x32xbf16>, vector<16x32xf32> -> vector<16x32xf32>
    %c0_17 = arith.constant 0 : index
    %c0_18 = arith.constant 0 : index
    %c0_19 = arith.constant 0 : index
    %41 = vector.load %arg5[%c0_17, %c0_18, %c0_19] : memref<1x1x32xf32, #tpu.memory_space<vmem>>, vector<1x1x32xf32>
    %42 = vector.shape_cast %41 : vector<1x1x32xf32> to vector<1x32xf32>
    %43 = vector.broadcast %42 : vector<1x32xf32> to vector<16x32xf32>
    %44 = arith.addf %40, %43 : vector<16x32xf32>
    %45 = arith.addf %3, %44 : vector<16x32xf32>
    %c0_20 = arith.constant 0 : index
    %c0_21 = arith.constant 0 : index
    %c0_22 = arith.constant 0 : index
    %46 = vector.load %arg6[%c0_20, %c0_21, %c0_22] : memref<1x1x32xf32, #tpu.memory_space<vmem>>, vector<1x1x32xf32>
    %47 = vector.shape_cast %46 : vector<1x1x32xf32> to vector<1x32xf32>
    %c0_23 = arith.constant 0 : index
    %c0_24 = arith.constant 0 : index
    %c0_25 = arith.constant 0 : index
    %48 = vector.load %arg7[%c0_23, %c0_24, %c0_25] : memref<1x1x32xf32, #tpu.memory_space<vmem>>, vector<1x1x32xf32>
    %49 = vector.shape_cast %48 : vector<1x1x32xf32> to vector<1x32xf32>
    %cst_26 = arith.constant dense<0.000000e+00> : vector<16xf32>
    %50 = vector.multi_reduction <add>, %45, %cst_26 [1] : vector<16x32xf32> to vector<16xf32>
    %51 = vector.shape_cast %50 : vector<16xf32> to vector<16x1xf32>
    %cst_27 = arith.constant 3.200000e+01 : f32
    %52 = vector.broadcast %cst_27 : f32 to vector<16x1xf32>
    %53 = arith.divf %51, %52 : vector<16x1xf32>
    %54 = vector.broadcast %53 : vector<16x1xf32> to vector<16x32xf32>
    %55 = arith.subf %45, %54 : vector<16x32xf32>
    %56 = arith.mulf %55, %55 : vector<16x32xf32>
    %cst_28 = arith.constant dense<0.000000e+00> : vector<16xf32>
    %57 = vector.multi_reduction <add>, %56, %cst_28 [1] : vector<16x32xf32> to vector<16xf32>
    %58 = vector.shape_cast %57 : vector<16xf32> to vector<16x1xf32>
    %cst_29 = arith.constant 3.200000e+01 : f32
    %59 = vector.broadcast %cst_29 : f32 to vector<16x1xf32>
    %60 = arith.divf %58, %59 : vector<16x1xf32>
    %61 = vector.broadcast %53 : vector<16x1xf32> to vector<16x32xf32>
    %62 = arith.subf %45, %61 : vector<16x32xf32>
    %cst_30 = arith.constant 9.99999996E-13 : f32
    %63 = vector.broadcast %cst_30 : f32 to vector<16x1xf32>
    %64 = arith.addf %60, %63 : vector<16x1xf32>
    %65 = math.rsqrt %64 : vector<16x1xf32>
    %66 = vector.broadcast %65 : vector<16x1xf32> to vector<16x32xf32>
    %67 = arith.mulf %62, %66 : vector<16x32xf32>
    %68 = vector.broadcast %47 : vector<1x32xf32> to vector<16x32xf32>
    %69 = arith.mulf %67, %68 : vector<16x32xf32>
    %70 = vector.broadcast %49 : vector<1x32xf32> to vector<16x32xf32>
    %71 = arith.addf %69, %70 : vector<16x32xf32>
    %72 = arith.truncf %71 : vector<16x32xf32> to vector<16x32xbf16>
    %c0_31 = arith.constant 0 : index
    %c0_32 = arith.constant 0 : index
    %c0_33 = arith.constant 0 : index
    %73 = vector.load %arg8[%c0_31, %c0_32, %c0_33] : memref<1x32x64xbf16, #tpu.memory_space<vmem>>, vector<1x32x64xbf16>
    %74 = vector.shape_cast %73 : vector<1x32x64xbf16> to vector<32x64xbf16>
    %cst_34 = arith.constant dense<0.000000e+00> : vector<16x64xf32>
    %75 = tpu.matmul %72, %74, %cst_34 {dimension_numbers = #tpu.dot_dimension_numbers<[1], [0], [0], [1], [0, 0, 1, 1], [], []>} : vector<16x32xbf16>, vector<32x64xbf16>, vector<16x64xf32> -> vector<16x64xf32>
    %c0_35 = arith.constant 0 : index
    %c0_36 = arith.constant 0 : index
    %c0_37 = arith.constant 0 : index
    %76 = vector.load %arg9[%c0_35, %c0_36, %c0_37] : memref<1x1x64xf32, #tpu.memory_space<vmem>>, vector<1x1x64xf32>
    %77 = vector.shape_cast %76 : vector<1x1x64xf32> to vector<1x64xf32>
    %78 = vector.broadcast %77 : vector<1x64xf32> to vector<16x64xf32>
    %79 = arith.addf %75, %78 : vector<16x64xf32>
    %80 = arith.mulf %79, %79 : vector<16x64xf32>
    %81 = arith.mulf %79, %80 : vector<16x64xf32>
    %cst_38 = arith.constant 4.471500e-02 : f32
    %82 = vector.broadcast %cst_38 : f32 to vector<16x64xf32>
    %83 = arith.mulf %82, %81 : vector<16x64xf32>
    %84 = arith.addf %79, %83 : vector<16x64xf32>
    %cst_39 = arith.constant 0.797884583 : f32
    %85 = vector.broadcast %cst_39 : f32 to vector<16x64xf32>
    %86 = arith.mulf %85, %84 : vector<16x64xf32>
    %87 = math.tanh %86 : vector<16x64xf32>
    %cst_40 = arith.constant 1.000000e+00 : f32
    %88 = vector.broadcast %cst_40 : f32 to vector<16x64xf32>
    %89 = arith.addf %88, %87 : vector<16x64xf32>
    %cst_41 = arith.constant 5.000000e-01 : f32
    %90 = vector.broadcast %cst_41 : f32 to vector<16x64xf32>
    %91 = arith.mulf %90, %89 : vector<16x64xf32>
    %92 = arith.mulf %79, %91 : vector<16x64xf32>
    %93 = arith.truncf %92 : vector<16x64xf32> to vector<16x64xbf16>
    %c0_42 = arith.constant 0 : index
    %c0_43 = arith.constant 0 : index
    %c0_44 = arith.constant 0 : index
    %94 = vector.load %arg10[%c0_42, %c0_43, %c0_44] : memref<1x64x32xbf16, #tpu.memory_space<vmem>>, vector<1x64x32xbf16>
    %95 = vector.shape_cast %94 : vector<1x64x32xbf16> to vector<64x32xbf16>
    %cst_45 = arith.constant dense<0.000000e+00> : vector<16x32xf32>
    %96 = tpu.matmul %93, %95, %cst_45 {dimension_numbers = #tpu.dot_dimension_numbers<[1], [0], [0], [1], [0, 0, 1, 1], [], []>} : vector<16x64xbf16>, vector<64x32xbf16>, vector<16x32xf32> -> vector<16x32xf32>
    %c0_46 = arith.constant 0 : index
    %c0_47 = arith.constant 0 : index
    %c0_48 = arith.constant 0 : index
    %97 = vector.load %arg11[%c0_46, %c0_47, %c0_48] : memref<1x1x32xf32, #tpu.memory_space<vmem>>, vector<1x1x32xf32>
    %98 = vector.shape_cast %97 : vector<1x1x32xf32> to vector<1x32xf32>
    %99 = vector.broadcast %98 : vector<1x32xf32> to vector<16x32xf32>
    %100 = arith.addf %96, %99 : vector<16x32xf32>
    %101 = arith.addf %71, %100 : vector<16x32xf32>
    %c0_49 = arith.constant 0 : index
    %c0_50 = arith.constant 0 : index
    %c0_51 = arith.constant 0 : index
    %102 = vector.load %arg12[%c0_49, %c0_50, %c0_51] : memref<1x1x32xf32, #tpu.memory_space<vmem>>, vector<1x1x32xf32>
    %103 = vector.shape_cast %102 : vector<1x1x32xf32> to vector<1x32xf32>
    %c0_52 = arith.constant 0 : index
    %c0_53 = arith.constant 0 : index
    %c0_54 = arith.constant 0 : index
    %104 = vector.load %arg13[%c0_52, %c0_53, %c0_54] : memref<1x1x32xf32, #tpu.memory_space<vmem>>, vector<1x1x32xf32>
    %105 = vector.shape_cast %104 : vector<1x1x32xf32> to vector<1x32xf32>
    %cst_55 = arith.constant dense<0.000000e+00> : vector<16xf32>
    %106 = vector.multi_reduction <add>, %101, %cst_55 [1] : vector<16x32xf32> to vector<16xf32>
    %107 = vector.shape_cast %106 : vector<16xf32> to vector<16x1xf32>
    %cst_56 = arith.constant 3.200000e+01 : f32
    %108 = vector.broadcast %cst_56 : f32 to vector<16x1xf32>
    %109 = arith.divf %107, %108 : vector<16x1xf32>
    %110 = vector.broadcast %109 : vector<16x1xf32> to vector<16x32xf32>
    %111 = arith.subf %101, %110 : vector<16x32xf32>
    %112 = arith.mulf %111, %111 : vector<16x32xf32>
    %cst_57 = arith.constant dense<0.000000e+00> : vector<16xf32>
    %113 = vector.multi_reduction <add>, %112, %cst_57 [1] : vector<16x32xf32> to vector<16xf32>
    %114 = vector.shape_cast %113 : vector<16xf32> to vector<16x1xf32>
    %cst_58 = arith.constant 3.200000e+01 : f32
    %115 = vector.broadcast %cst_58 : f32 to vector<16x1xf32>
    %116 = arith.divf %114, %115 : vector<16x1xf32>
    %117 = vector.broadcast %109 : vector<16x1xf32> to vector<16x32xf32>
    %118 = arith.subf %101, %117 : vector<16x32xf32>
    %cst_59 = arith.constant 9.99999996E-13 : f32
    %119 = vector.broadcast %cst_59 : f32 to vector<16x1xf32>
    %120 = arith.addf %116, %119 : vector<16x1xf32>
    %121 = math.rsqrt %120 : vector<16x1xf32>
    %122 = vector.broadcast %121 : vector<16x1xf32> to vector<16x32xf32>
    %123 = arith.mulf %118, %122 : vector<16x32xf32>
    %124 = vector.broadcast %103 : vector<1x32xf32> to vector<16x32xf32>
    %125 = arith.mulf %123, %124 : vector<16x32xf32>
    %126 = vector.broadcast %105 : vector<1x32xf32> to vector<16x32xf32>
    %127 = arith.addf %125, %126 : vector<16x32xf32>
    %c0_60 = arith.constant 0 : index
    %c0_61 = arith.constant 0 : index
    %128 = vector.load %arg19[%c0_60, %c0_61] : memref<16x32xf32, #tpu.memory_space<vmem>>, vector<16x32xf32>
    tpu.vector_store %arg19[%c0_60, %c0_61], %127 {strides = array<i32>} : memref<16x32xf32, #tpu.memory_space<vmem>>, vector<16x32xf32>,
    %c1_i32 = arith.constant 1 : i32
    %129 = arith.cmpi eq, %arg0, %c1_i32 : i32
    %130 = arith.extui %129 : i1 to i32
    %c0_i32_62 = arith.constant 0 : i32
    %131 = arith.cmpi ne, %130, %c0_i32_62 : i32
    scf.if %131 {
      %132 = vector.shape_cast %127 : vector<16x32xf32> to vector<2x8x32xf32>
      %133 = vector.extract_strided_slice %132 {offsets = [0, 0, 0], sizes = [2, 1, 32], strides = [1, 1, 1]} : vector<2x8x32xf32> to vector<2x1x32xf32>
      %134 = vector.shape_cast %133 : vector<2x1x32xf32> to vector<2x32xf32>
      %135 = arith.truncf %134 : vector<2x32xf32> to vector<2x32xbf16>
      %c0_63 = arith.constant 0 : index
      %c0_64 = arith.constant 0 : index
      %136 = vector.load %arg14[%c0_63, %c0_64] : memref<32x32xbf16, #tpu.memory_space<vmem>>, vector<32x32xbf16>
      %cst_65 = arith.constant dense<0.000000e+00> : vector<2x32xf32>
      %137 = tpu.matmul %135, %136, %cst_65 {dimension_numbers = #tpu.dot_dimension_numbers<[1], [0], [0], [1], [0, 0, 1, 1], [], []>} : vector<2x32xbf16>, vector<32x32xbf16>, vector<2x32xf32> -> vector<2x32xf32>
      %c0_66 = arith.constant 0 : index
      %c0_67 = arith.constant 0 : index
      %138 = vector.load %arg15[%c0_66, %c0_67] : memref<1x32xf32, #tpu.memory_space<vmem>>, vector<1x32xf32>
      %139 = vector.broadcast %138 : vector<1x32xf32> to vector<2x32xf32>
      %140 = arith.addf %137, %139 : vector<2x32xf32>
      %141 = math.tanh %140 : vector<2x32xf32>
      %142 = math.tanh %141 : vector<2x32xf32>
      %143 = arith.truncf %142 : vector<2x32xf32> to vector<2x32xbf16>
      %c0_68 = arith.constant 0 : index
      %c0_69 = arith.constant 0 : index
      %144 = vector.load %arg16[%c0_68, %c0_69] : memref<32x128xbf16, #tpu.memory_space<vmem>>, vector<32x128xbf16>
      %cst_70 = arith.constant dense<0.000000e+00> : vector<2x128xf32>
      %145 = tpu.matmul %143, %144, %cst_70 {dimension_numbers = #tpu.dot_dimension_numbers<[1], [0], [0], [1], [0, 0, 1, 1], [], []>} : vector<2x32xbf16>, vector<32x128xbf16>, vector<2x128xf32> -> vector<2x128xf32>
      %c0_71 = arith.constant 0 : index
      %c0_72 = arith.constant 0 : index
      %146 = vector.load %arg17[%c0_71, %c0_72] : memref<1x128xf32, #tpu.memory_space<vmem>>, vector<1x128xf32>
      %147 = vector.broadcast %146 : vector<1x128xf32> to vector<2x128xf32>
      %148 = arith.addf %145, %147 : vector<2x128xf32>
      %149 = arith.negf %148 : vector<2x128xf32>
      %150 = math.exp %149 : vector<2x128xf32>
      %cst_73 = arith.constant 1.000000e+00 : f32
      %151 = vector.broadcast %cst_73 : f32 to vector<2x128xf32>
      %152 = arith.addf %151, %150 : vector<2x128xf32>
      %153 = arith.divf %151, %152 : vector<2x128xf32>
      %c0_74 = arith.constant 0 : index
      %c0_75 = arith.constant 0 : index
      %154 = vector.load %arg18[%c0_74, %c0_75] : memref<2x128xf32, #tpu.memory_space<vmem>>, vector<2x128xf32>
      tpu.vector_store %arg18[%c0_74, %c0_75], %153 {strides = array<i32>} : memref<2x128xf32, #tpu.memory_space<vmem>>, vector<2x128xf32>,
    } else {
    }
    return
  }
  func.func @transform_0(%arg0: i32) -> (i32, i32, i32) {
    %c0_i32 = arith.constant 0 : i32
    %c0_i32_0 = arith.constant 0 : i32
    %c0_i32_1 = arith.constant 0 : i32
    %c0_i32_2 = arith.constant 0 : i32
    return %c0_i32, %c0_i32_0, %c0_i32_1 : i32, i32, i32
  }
  func.func @transform_1(%arg0: i32) -> (i32, i32, i32) {
    %c0_i32 = arith.constant 0 : i32
    %c0_i32_0 = arith.constant 0 : i32
    %c0_i32_1 = arith.constant 0 : i32
    return %arg0, %c0_i32, %c0_i32_0 : i32, i32, i32
  }
  func.func @transform_2(%arg0: i32) -> (i32, i32, i32) {
    %c0_i32 = arith.constant 0 : i32
    %c0_i32_0 = arith.constant 0 : i32
    %c0_i32_1 = arith.constant 0 : i32
    return %arg0, %c0_i32, %c0_i32_0 : i32, i32, i32
  }
  func.func @transform_3(%arg0: i32) -> (i32, i32, i32) {
    %c0_i32 = arith.constant 0 : i32
    %c0_i32_0 = arith.constant 0 : i32
    %c0_i32_1 = arith.constant 0 : i32
    return %arg0, %c0_i32, %c0_i32_0 : i32, i32, i32
  }
  func.func @transform_4(%arg0: i32) -> (i32, i32, i32) {
    %c0_i32 = arith.constant 0 : i32
    %c0_i32_0 = arith.constant 0 : i32
    %c0_i32_1 = arith.constant 0 : i32
    return %arg0, %c0_i32, %c0_i32_0 : i32, i32, i32
  }
  func.func @transform_5(%arg0: i32) -> (i32, i32, i32) {
    %c0_i32 = arith.constant 0 : i32
    %c0_i32_0 = arith.constant 0 : i32
    %c0_i32_1 = arith.constant 0 : i32
    return %arg0, %c0_i32, %c0_i32_0 : i32, i32, i32
  }
  func.func @transform_6(%arg0: i32) -> (i32, i32, i32) {
    %c0_i32 = arith.constant 0 : i32
    %c0_i32_0 = arith.constant 0 : i32
    %c0_i32_1 = arith.constant 0 : i32
    return %arg0, %c0_i32, %c0_i32_0 : i32, i32, i32
  }
  func.func @transform_7(%arg0: i32) -> (i32, i32, i32) {
    %c0_i32 = arith.constant 0 : i32
    %c0_i32_0 = arith.constant 0 : i32
    %c0_i32_1 = arith.constant 0 : i32
    return %arg0, %c0_i32, %c0_i32_0 : i32, i32, i32
  }
  func.func @transform_8(%arg0: i32) -> (i32, i32, i32) {
    %c0_i32 = arith.constant 0 : i32
    %c0_i32_0 = arith.constant 0 : i32
    %c0_i32_1 = arith.constant 0 : i32
    return %arg0, %c0_i32, %c0_i32_0 : i32, i32, i32
  }
  func.func @transform_9(%arg0: i32) -> (i32, i32, i32) {
    %c0_i32 = arith.constant 0 : i32
    %c0_i32_0 = arith.constant 0 : i32
    %c0_i32_1 = arith.constant 0 : i32
    return %arg0, %c0_i32, %c0_i32_0 : i32, i32, i32
  }
  func.func @transform_10(%arg0: i32) -> (i32, i32, i32) {
    %c0_i32 = arith.constant 0 : i32
    %c0_i32_0 = arith.constant 0 : i32
    %c0_i32_1 = arith.constant 0 : i32
    return %arg0, %c0_i32, %c0_i32_0 : i32, i32, i32
  }
  func.func @transform_11(%arg0: i32) -> (i32, i32, i32) {
    %c0_i32 = arith.constant 0 : i32
    %c0_i32_0 = arith.constant 0 : i32
    %c0_i32_1 = arith.constant 0 : i32
    return %arg0, %c0_i32, %c0_i32_0 : i32, i32, i32
  }
  func.func @transform_12(%arg0: i32) -> (i32, i32, i32) {
    %c0_i32 = arith.constant 0 : i32
    %c0_i32_0 = arith.constant 0 : i32
    %c0_i32_1 = arith.constant 0 : i32
    return %arg0, %c0_i32, %c0_i32_0 : i32, i32, i32
  }
  func.func @transform_13(%arg0: i32) -> (i32, i32) {
    %c0_i32 = arith.constant 0 : i32
    %c0_i32_0 = arith.constant 0 : i32
    %c0_i32_1 = arith.constant 0 : i32
    return %c0_i32, %c0_i32_0 : i32, i32
  }
  func.func @transform_14(%arg0: i32) -> (i32, i32) {
    %c0_i32 = arith.constant 0 : i32
    %c0_i32_0 = arith.constant 0 : i32
    %c0_i32_1 = arith.constant 0 : i32
    return %c0_i32, %c0_i32_0 : i32, i32
  }
  func.func @transform_15(%arg0: i32) -> (i32, i32) {
    %c0_i32 = arith.constant 0 : i32
    %c0_i32_0 = arith.constant 0 : i32
    %c0_i32_1 = arith.constant 0 : i32
    return %c0_i32, %c0_i32_0 : i32, i32
  }
  func.func @transform_16(%arg0: i32) -> (i32, i32) {
    %c0_i32 = arith.constant 0 : i32
    %c0_i32_0 = arith.constant 0 : i32
    %c0_i32_1 = arith.constant 0 : i32
    return %c0_i32, %c0_i32_0 : i32, i32
  }
  func.func @transform_17(%arg0: i32) -> (i32, i32) {
    %c0_i32 = arith.constant 0 : i32
    %c0_i32_0 = arith.constant 0 : i32
    %c0_i32_1 = arith.constant 0 : i32
    return %c0_i32, %c0_i32_0 : i32, i32
  }
}

</mosaic_0001>

<bundles_post_ra>
// kernel: tpu_custom_call.1
= control target key start
LH: loop header
LB: loop body
LE: loop exit
PB: predicated region body
PF: predicated region fallthrough
CT: control target
= control target key end

     0   :  { %s3296_s0 = inlined_call_operand.hbm [shape: f32[2,8,32], index: 0, kind: input, shape index: {}]   ;;  %s3297_s1 = inlined_call_operand.vmem [shape: bf16[2,32,96], index: 1, kind: input, shape index: {}]   ;;  %s3298_s2 = inlined_call_operand.hbm [shape: f32[2,1,96], index: 2, kind: input, shape index: {}]   ;;  %s3299_s3 = inlined_call_operand.vmem [shape: bf16[2,32,32], index: 3, kind: input, shape index: {}]   ;;  %s3300_s4 = inlined_call_operand.hbm [shape: f32[2,1,32], index: 4, kind: input, shape index: {}]   ;;  %s3301_s5 = inlined_call_operand.hbm [shape: f32[2,1,32], index: 5, kind: input, shape index: {}]   ;;  %s3302_s6 = inlined_call_operand.hbm [shape: f32[2,1,32], index: 6, kind: input, shape index: {}]   ;;  %s3303_s7 = inlined_call_operand.vmem [shape: bf16[2,32,64], index: 7, kind: input, shape index: {}]   ;;  %s3304_s8 = inlined_call_operand.hbm [shape: f32[2,1,64], index: 8, kind: input, shape index: {}]   ;;  %s3305_s9 = inlined_call_operand.vmem [shape: bf16[2,64,32], index: 9, kind: input, shape index: {}]   ;;  %s3306_s10 = inlined_call_operand.hbm [shape: f32[2,1,32], index: 10, kind: input, shape index: {}]   ;;  %s3307_s11 = inlined_call_operand.hbm [shape: f32[2,1,32], index: 11, kind: input, shape index: {}]   ;;  %s3308_s12 = inlined_call_operand.hbm [shape: f32[2,1,32], index: 12, kind: input, shape index: {}]   ;;  %s3309_s13 = inlined_call_operand.vmem [shape: bf16[32,32], index: 13, kind: input, shape index: {}]   ;;  %s3310_s14 = inlined_call_operand.vmem [shape: f32[1,32], index: 14, kind: input, shape index: {}]   ;;  %s3311_s15 = inlined_call_operand.hbm [shape: bf16[32,128], index: 15, kind: input, shape index: {}]   ;;  %s3312_s16 = inlined_call_operand.vmem [shape: f32[1,128], index: 16, kind: input, shape index: {}]   ;;  %s3313_s17 = inlined_call_operand.hbm [shape: f32[2,128], index: 17, kind: output, shape index: {}]  }
   0x1   :  { %3330 = sst [smem:[#allocation31_spill]] %s3296_s0 }
   0x2   :  { %3331 = sst [smem:[#allocation32_spill]] %s3297_s1 }
   0x3   :  { %3332 = sst [smem:[#allocation33_spill]] %s3298_s2 }
   0x4   :  { %3333 = sst [smem:[#allocation34_spill]] %s3301_s5 }
   0x5   :  { %3334 = sst [smem:[#allocation35_spill]] %s3304_s8 }
   0x6   :  { %3335 = sst [smem:[#allocation36_spill]] %s3305_s9 }
   0x7   :  { %3336 = sst [smem:[#allocation37_spill]] %s3307_s11 }
   0x8   :  { %3337 = sst [smem:[#allocation38_spill]] %s3309_s13 }
   0x9   :  { %3338 = sst [smem:[#allocation39_spill]] %s3310_s14 }
   0xa   :  { %3339 = sst [smem:[#allocation40_spill]] %s3312_s16 }
   0xb   :  { %3340 = sst [smem:[#allocation41_spill]] %s3313_s17 }
   0xc   :  { %22 = vsyncpa [#allocation4], 0 }
   0xd   :  { %23 = vsyncpa [#allocation7], 0 }
   0xe   :  { %25 = vsyncpa [#allocation7 + $0x1], 0 }
   0xf   :  { %26 = vsyncpa [#allocation10], 0 }
  0x10   :  { %28 = vsyncpa [#allocation10 + $0x1], 0 }
  0x11   :  { %29 = vsyncpa [#allocation13], 0 }
  0x12   :  { %31 = vsyncpa [#allocation13 + $0x1], 0 }
  0x13   :  { %32 = vsyncpa [#allocation16], 0 }
  0x14   :  { %34 = vsyncpa [#allocation16 + $0x1], 0 }
  0x15   :  { %35 = vsyncpa [#allocation19], 0 }
  0x16   :  { %36 = vsyncpa [#allocation5], 0  ;;  %s2752_s24 = smov 0   ;;  %s2754_s25 = smov 0  }
  0x17   :  { %s2756_s26 = smov 0   ;;  %s2758_s27 = smov 0  }
  0x18 LB: > { %3341 = sst [smem:[#allocation28_spill]] %s2635_s26  ;;  %s2773_s28 = sadd.s32 1, %s2639_s27   ;;  %s2639_s27 = sphi %s2758_s27, %s3385_s27   ;;  %s2635_s26 = sphi %s2756_s26, %s3387_s26   ;;  %s2631_s25 = sphi %s2754_s25, %s3389_s25   ;;  %s2627_s24 = sphi %s2752_s24, %s3388_s24  }
  0x19   : > { %3342 = sst [smem:[#allocation29_spill]] %s2773_s28  ;;  %s96_s29 = sadd.s32 1, %s2635_s26 }
  0x1a   : > { %s93_s0 = ssub.s32 %s2639_s27, %s2773_s28  ;;  %p103_p0 = scmp.ne.s32.totalorder %s2635_s26, %s2631_s25 }
  0x1b   : > { %p94_p1 = scmp.eq.s32.totalorder %s93_s0, 0  ;;  %p104_p2 = scmp.eq.s32.totalorder %s2639_s27, 0 }
  0x1c   : > { %p2167_p3 = scmp.lt.s32.totalorder %s2639_s27, 2  ;;  %s2786_s18 = sand.u32 1, %s2639_s27  }
  0x1d   : > { %s2783_s30 = scalar_select %p94_p1, %s2635_s26, %s96_s29  }
  0x1e   : > { %p105_p4 = por %p104_p2, %p103_p0  ;;  %s2789_s19 = sand.u32 1, %s2635_s26  }
  0x1f   : > { %3343 = sst [smem:[#allocation30_spill]] %s2783_s30  ;;  %s2792_s1 = sshll.u32 %s2639_s27, 4 }
  0x20   : > { %s3344_s2 = sld [smem:[#allocation33_spill]]  ;;  %s544_s23 = scalar_lea.vmem [#allocation6], %s2789_s19 }
  0x21   : > { %s551_s29 = sshll.u32 %s544_s23, 4  ;;  %p2803_p5 = pnand %p2167_p3, %p105_p4  ;;  %s2801_s29 = int_to_ptr.vmem [resolvable:$true] %s551_s29 }
  0x22   : > { %s3346_s5 = sld [smem:[#allocation34_spill]] }
  0x23   : > { %s3345_s0 = scalar_select %p2803_p5, 1, 0 }
  0x24   : > { %p2818_p7 = pneg %p2803_p5 }
  0x26   : > { %s2798_s22 = scalar_lea.hbm %s3344_s2, %s2792_s1  ;;  %s2264_s14 = scalar_lea.hbm %s3344_s2, 32 }
  0x27   : > { %s2259_s28 = scalar_lea.hbm %s2798_s22, 16  ;;  %p2265_p10 = scmp.lt.u32.totalorder %s2798_s22, %s3344_s2 }
  0x28   : > { %s2811_s20 = scalar_lea.hbm %s3346_s5, %s2792_s1  ;;  %p2260_p6 = scmp.ne.s32.totalorder %s2798_s22, %s2259_s28 }
  0x29   : > { %s3347_s17 = scalar_select %p2818_p7, 1, 0 }
  0x2a   : > { %p2262_p8 = pnand %p2818_p7, %p2260_p6  ;;  %p2266_p11 = scmp.lt.u32.totalorder %s2264_s14, %s2259_s28 }
  0x2b   : > { %p2268_p13 = scmp.lt.u32.totalorder %s2259_s28, %s2798_s22 }
  0x2c   : > { %p2263_p9 = pneg %p2262_p8  ;;  %p2267_p12 = por %p2266_p11, %p2265_p10 }
  0x2e   : > { %p2269_p0 = por %p2268_p13, %p2267_p12 }
  0x30   : > { %p2270_p1 = pnand %p2269_p0, %p2263_p9 }
  0x32   : > { %2273 = shalt.err (!%p2270_p1)
}
  0x33   : > { %s2274_s21 = scalar_lea.vmem %s2801_s29, 16  ;;  %s2641_s16 = smov [#allocation6]  }
  0x34   : > { %p2275_p2 = scmp.ne.s32.totalorder %s2801_s29, %s2274_s21  ;;  %s2279_s23 = sshll.u32 %s2641_s16, 4  ;;  %s2280_s23 = int_to_ptr.vmem [resolvable:$false] %s2279_s23 }
  0x35   : > { %s2281_s26 = scalar_lea.vmem %s2280_s23, 32  ;;  %p2282_p6 = scmp.lt.s32.totalorder %s2801_s29, %s2280_s23 }
  0x36   : > { %p2277_p3 = pnand %p2275_p2, %p2818_p7  ;;  %p2283_p8 = scmp.lt.s32.totalorder %s2281_s26, %s2274_s21 }
  0x38   : > { %p2278_p4 = pneg %p2277_p3  ;;  %p2284_p10 = por %p2283_p8, %p2282_p6 }
  0x3a   : > { %p2285_p11 = pnand %p2284_p10, %p2278_p4 }
  0x3c   : > { %2288 = shalt.err (!%p2285_p11)
}
  0x3d   : > { %s3348_s14 = scalar_lea.sflag [#allocation7], %s2786_s18  ;;  %s586_s28 = scalar_lea.vmem [#allocation9], %s2789_s19 }
  0x3e   : > { %2143 = dma.hbm_to_vmem [thread:$0]  (!%p2803_p5), %s2798_s22, 16, %s2801_s29, %s3348_s14  }
  0x3f   : > { %s593_s30 = sshll.u32 %s586_s28, 4  ;;  %s3324_s21 = scalar_lea.sflag [#allocation10], %s2786_s18  ;;  %s594_s30 = int_to_ptr.vmem [resolvable:$true] %s593_s30 }
  0x40   : > { %s2289_s16 = scalar_lea.hbm %s2811_s20, 16  ;;  %s2294_s2 = scalar_lea.hbm %s3346_s5, 32 }
  0x41   : > { %p2290_p9 = scmp.ne.s32.totalorder %s2811_s20, %s2289_s16  ;;  %p2295_p0 = scmp.lt.u32.totalorder %s2811_s20, %s3346_s5 }
  0x42   : > { %p2296_p1 = scmp.lt.u32.totalorder %s2294_s2, %s2289_s16  ;;  %p2298_p3 = scmp.lt.u32.totalorder %s2289_s16, %s2811_s20 }
  0x43   : > { %p2292_p12 = pnand %p2290_p9, %p2818_p7 }
  0x44   : > { %p2297_p2 = por %p2296_p1, %p2295_p0 }
  0x45   : > { %p2293_p13 = pneg %p2292_p12 }
  0x46   : > { %p2299_p4 = por %p2298_p3, %p2297_p2 }
  0x48   : > { %p2300_p6 = pnand %p2299_p4, %p2293_p13 }
  0x4a   : > { %2303 = shalt.err (!%p2300_p6)
}
  0x4b   : > { %s2304_s22 = scalar_lea.vmem %s594_s30, 16  ;;  %s2642_s29 = smov [#allocation9]  }
  0x4c   : > { %p2305_p8 = scmp.ne.s32.totalorder %s594_s30, %s2304_s22  ;;  %s2309_s14 = sshll.u32 %s2642_s29, 4  ;;  %s2310_s14 = int_to_ptr.vmem [resolvable:$false] %s2309_s14 }
  0x4d   : > { %s2311_s28 = scalar_lea.vmem %s2310_s14, 32  ;;  %p2312_p9 = scmp.lt.s32.totalorder %s594_s30, %s2310_s14 }
  0x4e   : > { %p2307_p10 = pnand %p2305_p8, %p2818_p7  ;;  %p2313_p12 = scmp.lt.s32.totalorder %s2311_s28, %s2304_s22 }
  0x50   : > { %p2308_p11 = pneg %p2307_p10  ;;  %p2314_p5 = por %p2313_p12, %p2312_p9 }
  0x52   : > { %p2315_p0 = pnand %p2314_p5, %p2308_p11 }
  0x54   : > { %2318 = shalt.err (!%p2315_p0)
}
  0x55   : > { %p3349_p1 = scmp.ne.s32.totalorder %s3345_s0, 0  ;;  %s3350_s8 = sld [smem:[#allocation35_spill]] }
  0x56   : > { %s628_s16 = scalar_lea.vmem [#allocation12], %s2789_s19  ;;  %s3322_s26 = scalar_lea.sflag [#allocation13], %s2786_s18 }
  0x57   : > { %2149 = dma.hbm_to_vmem [thread:$0]  (!%p3349_p1), %s2811_s20, 16, %s594_s30, %s3324_s21  }
  0x58   : > { %s635_s23 = sshll.u32 %s628_s16, 4  ;;  %s636_s23 = int_to_ptr.vmem [resolvable:$true] %s635_s23 }
  0x5b   : > { %s2868_s13 = scalar_lea.hbm %s3350_s8, %s2792_s1  ;;  %s2324_s30 = scalar_lea.hbm %s3350_s8, 32 }
  0x5c   : > { %s2319_s22 = scalar_lea.hbm %s2868_s13, 16  ;;  %p2325_p3 = scmp.lt.u32.totalorder %s2868_s13, %s3350_s8 }
  0x5d   : > { %p2320_p5 = scmp.ne.s32.totalorder %s2868_s13, %s2319_s22  ;;  %p2326_p4 = scmp.lt.u32.totalorder %s2324_s30, %s2319_s22 }
  0x5e   : > { %p2328_p8 = scmp.lt.u32.totalorder %s2319_s22, %s2868_s13 }
  0x5f   : > { %p2322_p13 = pnand %p2320_p5, %p2818_p7  ;;  %p2327_p6 = por %p2326_p4, %p2325_p3 }
  0x61   : > { %p2323_p2 = pneg %p2322_p13  ;;  %p2329_p10 = por %p2328_p8, %p2327_p6 }
  0x63   : > { %p2330_p11 = pnand %p2329_p10, %p2323_p2 }
  0x65   : > { %2333 = shalt.err (!%p2330_p11)
}
  0x66   : > { %s2334_s2 = scalar_lea.vmem %s636_s23, 16  ;;  %s2643_s9 = smov [#allocation12]  }
  0x67   : > { %p2335_p9 = scmp.ne.s32.totalorder %s636_s23, %s2334_s2  ;;  %s2339_s16 = sshll.u32 %s2643_s9, 4  ;;  %s2340_s16 = int_to_ptr.vmem [resolvable:$false] %s2339_s16 }
  0x68   : > { %s2341_s29 = scalar_lea.vmem %s2340_s16, 32  ;;  %p2342_p5 = scmp.lt.s32.totalorder %s636_s23, %s2340_s16 }
  0x69   : > { %p2337_p12 = pnand %p2335_p9, %p2818_p7  ;;  %p2343_p13 = scmp.lt.s32.totalorder %s2341_s29, %s2334_s2 }
  0x6b   : > { %p2338_p0 = pneg %p2337_p12  ;;  %p2344_p1 = por %p2343_p13, %p2342_p5 }
  0x6d   : > { %p2345_p3 = pnand %p2344_p1, %p2338_p0 }
  0x6f   : > { %2348 = shalt.err (!%p2345_p3)
}
  0x70   : > { %p3351_p4 = scmp.ne.s32.totalorder %s3345_s0, 0  ;;  %s3352_s11 = sld [smem:[#allocation37_spill]] }
  0x71   : > { %s670_s14 = scalar_lea.vmem [#allocation15], %s2789_s19  ;;  %s3323_s2 = scalar_lea.sflag [#allocation16], %s2786_s18 }
  0x72   : > { %2155 = dma.hbm_to_vmem [thread:$0]  (!%p3351_p4), %s2868_s13, 16, %s636_s23, %s3322_s26  }
  0x73   : > { %s677_s28 = sshll.u32 %s670_s14, 4  ;;  %s678_s28 = int_to_ptr.vmem [resolvable:$true] %s677_s28 }
  0x76   : > { %s2895_s30 = scalar_lea.hbm %s3352_s11, %s2792_s1  ;;  %s2354_s23 = scalar_lea.hbm %s3352_s11, 32 }
  0x77   : > { %s2349_s9 = scalar_lea.hbm %s2895_s30, 16  ;;  %p2355_p8 = scmp.lt.u32.totalorder %s2895_s30, %s3352_s11 }
  0x78   : > { %p2350_p1 = scmp.ne.s32.totalorder %s2895_s30, %s2349_s9  ;;  %p2356_p10 = scmp.lt.u32.totalorder %s2354_s23, %s2349_s9 }
  0x79   : > { %p2358_p9 = scmp.lt.u32.totalorder %s2349_s9, %s2895_s30 }
  0x7a   : > { %p2352_p2 = pnand %p2350_p1, %p2818_p7  ;;  %p2357_p11 = por %p2356_p10, %p2355_p8 }
  0x7c   : > { %p2353_p6 = pneg %p2352_p2  ;;  %p2359_p12 = por %p2358_p9, %p2357_p11 }
  0x7e   : > { %p2360_p0 = pnand %p2359_p12, %p2353_p6 }
  0x80   : > { %2363 = shalt.err (!%p2360_p0)
}
  0x81   : > { %s2364_s20 = scalar_lea.vmem %s678_s28, 16  ;;  %s2644_s14 = smov [#allocation15]  }
  0x82   : > { %p2365_p5 = scmp.ne.s32.totalorder %s678_s28, %s2364_s20  ;;  %s2369_s26 = sshll.u32 %s2644_s14, 4  ;;  %s2370_s26 = int_to_ptr.vmem [resolvable:$false] %s2369_s26 }
  0x83   : > { %s2371_s16 = scalar_lea.vmem %s2370_s26, 32  ;;  %p2372_p1 = scmp.lt.s32.totalorder %s678_s28, %s2370_s26 }
  0x84   : > { %p2367_p13 = pnand %p2365_p5, %p2818_p7  ;;  %p2373_p2 = scmp.lt.s32.totalorder %s2371_s16, %s2364_s20 }
  0x86   : > { %p2368_p3 = pneg %p2367_p13  ;;  %p2374_p4 = por %p2373_p2, %p2372_p1 }
  0x88   : > { %p2375_p8 = pnand %p2374_p4, %p2368_p3 }
  0x8a   : > { %2378 = shalt.err (!%p2375_p8)
}
  0x8b   : > { %p3353_p10 = scmp.ne.s32.totalorder %s3345_s0, 0  ;;  %s2919_s9 = sadd.s32 4294967295, %s2639_s27  }
  0x8c   : > { %p109_p6 = scmp.ne.s32.totalorder %s2631_s25, %s2627_s24  ;;  %p3325_p4 = scmp.eq.s32.totalorder %s2919_s9, 0 }
  0x8d   : > { %2161 = dma.hbm_to_vmem [thread:$0]  (!%p3353_p10), %s2895_s30, 16, %s678_s28, %s3323_s2  }
  0x8e   : > { %p1933_p11 = scmp.ge.s32.totalorder %s2639_s27, 1  ;;  %p485_p9 = scmp.lt.s32.totalorder %s2639_s27, 3 }
  0x8f   : > { %p2929_p0 = por %p3325_p4, %p109_p6  ;;  %s2645_s30 = smov [#allocation3]  }
  0x90   : > { %p2933_p5 = pnand %p1933_p11, %p485_p9  ;;  %s497_s28 = sshll.u32 %s2645_s30, 4  ;;  %s498_s28 = int_to_ptr.vmem [resolvable:$true] %s497_s28 }
  0x91   : > { %s3354_s26 = scalar_select %p2929_p0, 1, 0 }
  0x92   : > { %s3355_s13 = scalar_select %p2933_p5, 1, 0 }
  0x93   : > { %p2133_p13 = pneg %p2933_p5  ;;  %s2646_s27 = smov [#allocation18]  }
  0x94   : > { %s516_s23 = sshll.u32 %s2646_s27, 4  ;;  %s3357_s20 = sld [smem:[#allocation31_spill]]  ;;  %s2945_s23 = int_to_ptr.vmem [resolvable:$true] %s516_s23 }
  0x95   : > { %p2941_p3 = pnand %p2133_p13, %p3325_p4 }
  0x97   : > { %p2381_p2 = pneg %p2941_p3 }
  0x9a   : > { %s2379_s14 = scalar_lea.hbm %s3357_s20, 256 }
  0x9b   : > { %p2380_p1 = scmp.ne.s32.totalorder %s3357_s20, %s2379_s14  ;;  %p2386_p11 = scmp.lt.u32.totalorder %s2379_s14, %s3357_s20 }
  0x9d   : > { %p2382_p8 = pnand %p2381_p2, %p2380_p1 }
  0x9f   : > { %p2383_p6 = pneg %p2382_p8 }
  0xa1   : > { %p2388_p9 = pnand %p2386_p11, %p2383_p6 }
  0xa3   : > { %2391 = shalt.err (!%p2388_p9)
}
  0xa4   : > { %s2392_s27 = scalar_lea.vmem %s498_s28, 256  ;;  %p2400_p0 = scmp.lt.s32.totalorder %s498_s28, %s498_s28 }
  0xa5   : > { %p2393_p13 = scmp.ne.s32.totalorder %s498_s28, %s2392_s27  ;;  %p2401_p5 = scmp.lt.s32.totalorder %s2392_s27, %s2392_s27 }
  0xa7   : > { %p2395_p12 = pnand %p2393_p13, %p2381_p2  ;;  %p2402_p10 = por %p2401_p5, %p2400_p0 }
  0xa9   : > { %p2396_p4 = pneg %p2395_p12 }
  0xab   : > { %p2403_p7 = pnand %p2402_p10, %p2396_p4 }
  0xad   : > { %2406 = shalt.err (!%p2403_p7)
}
  0xae   : > { %s2647_s29 = smov 128   ;;  %s2648_s22 = smov 8  }
  0xaf   : > { %2136 = dma.hbm_to_vmem [thread:$0]  (!%p2941_p3), %s3357_s20, 256, %s498_s28, [#allocation4], %s2647_s29, %s2647_s29, %s2648_s22  }
  0xb0   : > { %s2407_s30 = scalar_lea.hbm %s3311_s15, 256 }
  0xb1   : > { %p2408_p12 = scmp.ne.s32.totalorder %s3311_s15, %s2407_s30  ;;  %p2414_p4 = scmp.lt.u32.totalorder %s2407_s30, %s3311_s15 }
  0xb3   : > { %p2410_p7 = pnand %p2408_p12, %p2381_p2 }
  0xb5   : > { %p2411_p10 = pneg %p2410_p7 }
  0xb7   : > { %p2416_p0 = pnand %p2414_p4, %p2411_p10 }
  0xb9   : > { %2419 = shalt.err (!%p2416_p0)
}
  0xba   : > { %s2420_s28 = scalar_lea.vmem %s2945_s23, 256  ;;  %p2428_p6 = scmp.lt.s32.totalorder %s2945_s23, %s2945_s23 }
  0xbb   : > { %p2421_p5 = scmp.ne.s32.totalorder %s2945_s23, %s2420_s28  ;;  %p2429_p11 = scmp.lt.s32.totalorder %s2420_s28, %s2420_s28 }
  0xbd   : > { %p2423_p1 = pnand %p2421_p5, %p2381_p2  ;;  %p2430_p9 = por %p2429_p11, %p2428_p6 }
  0xbf   : > { %p2424_p8 = pneg %p2423_p1 }
  0xc1   : > { %p2431_p13 = pnand %p2430_p9, %p2424_p8 }
  0xc3   : > { %2434 = shalt.err (!%p2431_p13)
}
  0xc4   : > { %s2649_s5 = smov 64   ;;  %s2650_s8 = smov 4  }
  0xc5   : > { %2139 = dma.hbm_to_vmem [thread:$0]  (!%p2941_p3), %s3311_s15, 256, %s2945_s23, [#allocation19], %s2649_s5, %s2649_s5, %s2650_s8  }
  0xc6   : > { %s2998_s2 = scalar_lea.hbm %s3300_s4, %s2792_s1  ;;  %s569_s14 = scalar_lea.vmem [#allocation8], %s2789_s19 }
  0xc7   : > { %s576_s16 = sshll.u32 %s569_s14, 4  ;;  %s2435_s30 = scalar_lea.hbm %s2998_s2, 16  ;;  %s577_s16 = int_to_ptr.vmem [resolvable:$true] %s576_s16 }
  0xc8   : > { %p2436_p2 = scmp.ne.s32.totalorder %s2998_s2, %s2435_s30  ;;  %p3358_p12 = scmp.ne.s32.totalorder %s3347_s17, 0 }
  0xc9   : > { %s2440_s23 = scalar_lea.hbm %s3300_s4, 32  ;;  %p2441_p3 = scmp.lt.u32.totalorder %s2998_s2, %s3300_s4 }
  0xca   : > { %p2438_p7 = pnand %p2436_p2, %p3358_p12  ;;  %p2442_p4 = scmp.lt.u32.totalorder %s2440_s23, %s2435_s30 }
  0xcb   : > { %p2444_p5 = scmp.lt.u32.totalorder %s2435_s30, %s2998_s2 }
  0xcc   : > { %p2439_p10 = pneg %p2438_p7  ;;  %p2443_p0 = por %p2442_p4, %p2441_p3 }
  0xce   : > { %p2445_p1 = por %p2444_p5, %p2443_p0 }
  0xd0   : > { %p2446_p8 = pnand %p2445_p1, %p2439_p10 }
  0xd2   : > { %2449 = shalt.err (!%p2446_p8)
}
  0xd3   : > { %s2450_s8 = scalar_lea.vmem %s577_s16, 16  ;;  %s2651_s11 = smov [#allocation8]  }
  0xd4   : > { %p2451_p6 = scmp.ne.s32.totalorder %s577_s16, %s2450_s8  ;;  %s2455_s29 = sshll.u32 %s2651_s11, 4  ;;  %s2456_s29 = int_to_ptr.vmem [resolvable:$false] %s2455_s29 }
  0xd5   : > { %s2457_s22 = scalar_lea.vmem %s2456_s29, 32  ;;  %p2458_p13 = scmp.lt.s32.totalorder %s577_s16, %s2456_s29 }
  0xd6   : > { %p2453_p11 = pnand %p2451_p6, %p3358_p12  ;;  %p2459_p2 = scmp.lt.s32.totalorder %s2457_s22, %s2450_s8 }
  0xd8   : > { %p2454_p9 = pneg %p2453_p11  ;;  %p2460_p7 = por %p2459_p2, %p2458_p13 }
  0xda   : > { %p2461_p3 = pnand %p2460_p7, %p2454_p9 }
  0xdc   : > { %2464 = shalt.err (!%p2461_p3)
}
  0xdd   : > { %p3359_p4 = scmp.ne.s32.totalorder %s3345_s0, 0  ;;  %s3360_s21 = scalar_lea.sflag [#allocation7], %s2786_s18 }
  0xde   : > { %s3024_s24 = scalar_lea.hbm %s3302_s6, %s2792_s1  ;;  %s603_s27 = scalar_lea.vmem [#allocation11], %s2789_s19 }
  0xdf   : > { %2146 = dma.hbm_to_vmem [thread:$0]  (!%p3359_p4), %s2998_s2, 16, %s577_s16, %s3360_s21  }
  0xe0   : > { %s610_s23 = sshll.u32 %s603_s27, 4  ;;  %s2465_s28 = scalar_lea.hbm %s3024_s24, 16  ;;  %s611_s23 = int_to_ptr.vmem [resolvable:$true] %s610_s23 }
  0xe1   : > { %p2466_p10 = scmp.ne.s32.totalorder %s3024_s24, %s2465_s28  ;;  %s2470_s2 = scalar_lea.hbm %s3302_s6, 32 }
  0xe2   : > { %p2471_p1 = scmp.lt.u32.totalorder %s3024_s24, %s3302_s6  ;;  %p2472_p8 = scmp.lt.u32.totalorder %s2470_s2, %s2465_s28 }
  0xe3   : > { %p2468_p0 = pnand %p2466_p10, %p3358_p12  ;;  %p2474_p11 = scmp.lt.u32.totalorder %s2465_s28, %s3024_s24 }
  0xe4   : > { %p2473_p6 = por %p2472_p8, %p2471_p1 }
  0xe5   : > { %p2469_p5 = pneg %p2468_p0 }
  0xe6   : > { %p2475_p9 = por %p2474_p11, %p2473_p6 }
  0xe8   : > { %p2476_p13 = pnand %p2475_p9, %p2469_p5 }
  0xea   : > { %2479 = shalt.err (!%p2476_p13)
}
  0xeb   : > { %s2480_s29 = scalar_lea.vmem %s611_s23, 16  ;;  %s2652_s22 = smov [#allocation11]  }
  0xec   : > { %p2481_p2 = scmp.ne.s32.totalorder %s611_s23, %s2480_s29  ;;  %s2485_s21 = sshll.u32 %s2652_s22, 4  ;;  %s2486_s21 = int_to_ptr.vmem [resolvable:$false] %s2485_s21 }
  0xed   : > { %s2487_s14 = scalar_lea.vmem %s2486_s21, 32  ;;  %p2488_p10 = scmp.lt.s32.totalorder %s611_s23, %s2486_s21 }
  0xee   : > { %p2483_p7 = pnand %p2481_p2, %p3358_p12  ;;  %p2489_p0 = scmp.lt.s32.totalorder %s2487_s14, %s2480_s29 }
  0xf0   : > { %p2484_p3 = pneg %p2483_p7  ;;  %p2490_p4 = por %p2489_p0, %p2488_p10 }
  0xf2   : > { %p2491_p1 = pnand %p2490_p4, %p2484_p3 }
  0xf4   : > { %2494 = shalt.err (!%p2491_p1)
}
  0xf5   : > { %p3361_p8 = scmp.ne.s32.totalorder %s3345_s0, 0  ;;  %s3362_s30 = scalar_lea.sflag [#allocation10], %s2786_s18 }
  0xf6   : > { %s3050_s5 = scalar_lea.hbm %s3306_s10, %s2792_s1  ;;  %s653_s8 = scalar_lea.vmem [#allocation14], %s2789_s19 }
  0xf7   : > { %2152 = dma.hbm_to_vmem [thread:$0]  (!%p3361_p8), %s3024_s24, 16, %s611_s23, %s3362_s30  }
  0xf8   : > { %s660_s2 = sshll.u32 %s653_s8, 4  ;;  %s2495_s16 = scalar_lea.hbm %s3050_s5, 16  ;;  %s661_s2 = int_to_ptr.vmem [resolvable:$true] %s660_s2 }
  0xf9   : > { %p2496_p4 = scmp.ne.s32.totalorder %s3050_s5, %s2495_s16  ;;  %s2500_s24 = scalar_lea.hbm %s3306_s10, 32 }
  0xfa   : > { %p2501_p11 = scmp.lt.u32.totalorder %s3050_s5, %s3306_s10  ;;  %p2502_p9 = scmp.lt.u32.totalorder %s2500_s24, %s2495_s16 }
  0xfb   : > { %p2498_p5 = pnand %p2496_p4, %p3358_p12  ;;  %p2504_p2 = scmp.lt.u32.totalorder %s2495_s16, %s3050_s5 }
  0xfc   : > { %p2503_p13 = por %p2502_p9, %p2501_p11 }
  0xfd   : > { %p2499_p6 = pneg %p2498_p5 }
  0xfe   : > { %p2505_p7 = por %p2504_p2, %p2503_p13 }
 0x100   : > { %p2506_p3 = pnand %p2505_p7, %p2499_p6 }
 0x102   : > { %2509 = shalt.err (!%p2506_p3)
}
 0x103   : > { %s2510_s21 = scalar_lea.vmem %s661_s2, 16  ;;  %s2653_s14 = smov [#allocation14]  }
 0x104   : > { %p2511_p10 = scmp.ne.s32.totalorder %s661_s2, %s2510_s21  ;;  %s2515_s30 = sshll.u32 %s2653_s14, 4  ;;  %s2516_s30 = int_to_ptr.vmem [resolvable:$false] %s2515_s30 }
 0x105   : > { %s2517_s27 = scalar_lea.vmem %s2516_s30, 32  ;;  %p2518_p4 = scmp.lt.s32.totalorder %s661_s2, %s2516_s30 }
 0x106   : > { %p2513_p0 = pnand %p2511_p10, %p3358_p12  ;;  %p2519_p5 = scmp.lt.s32.totalorder %s2517_s27, %s2510_s21 }
 0x108   : > { %p2514_p1 = pneg %p2513_p0  ;;  %p2520_p8 = por %p2519_p5, %p2518_p4 }
 0x10a   : > { %p2521_p9 = pnand %p2520_p8, %p2514_p1 }
 0x10c   : > { %2524 = shalt.err (!%p2521_p9)
}
 0x10d   : > { %p3363_p11 = scmp.ne.s32.totalorder %s3345_s0, 0  ;;  %s3364_s28 = scalar_lea.sflag [#allocation13], %s2786_s18 }
 0x10e   : > { %s3076_s11 = scalar_lea.hbm %s3308_s12, %s2792_s1  ;;  %s687_s29 = scalar_lea.vmem [#allocation17], %s2789_s19 }
 0x10f   : > { %2158 = dma.hbm_to_vmem [thread:$0]  (!%p3363_p11), %s3050_s5, 16, %s661_s2, %s3364_s28  }
 0x110   : > { %s694_s24 = sshll.u32 %s687_s29, 4  ;;  %s2525_s23 = scalar_lea.hbm %s3076_s11, 16  ;;  %s695_s24 = int_to_ptr.vmem [resolvable:$true] %s694_s24 }
 0x111   : > { %p2526_p8 = scmp.ne.s32.totalorder %s3076_s11, %s2525_s23  ;;  %s2530_s5 = scalar_lea.hbm %s3308_s12, 32 }
 0x112   : > { %p2531_p2 = scmp.lt.u32.totalorder %s3076_s11, %s3308_s12  ;;  %p2532_p7 = scmp.lt.u32.totalorder %s2530_s5, %s2525_s23 }
 0x113   : > { %p2528_p6 = pnand %p2526_p8, %p3358_p12  ;;  %p2534_p10 = scmp.lt.u32.totalorder %s2525_s23, %s3076_s11 }
 0x114   : > { %p2533_p3 = por %p2532_p7, %p2531_p2 }
 0x115   : > { %p2529_p13 = pneg %p2528_p6 }
 0x116   : > { %p2535_p0 = por %p2534_p10, %p2533_p3 }
 0x118   : > { %p2536_p1 = pnand %p2535_p0, %p2529_p13 }
 0x11a   : > { %2539 = shalt.err (!%p2536_p1)
}
 0x11b   : > { %s2540_s19 = scalar_lea.vmem %s695_s24, 16  ;;  %s2654_s1 = smov [#allocation17]  }
 0x11c   : > { %p2541_p4 = scmp.ne.s32.totalorder %s695_s24, %s2540_s19  ;;  %s2545_s30 = sshll.u32 %s2654_s1, 4  ;;  %s2546_s30 = int_to_ptr.vmem [resolvable:$false] %s2545_s30 }
 0x11d   : > { %s2547_s27 = scalar_lea.vmem %s2546_s30, 32  ;;  %p2548_p8 = scmp.lt.s32.totalorder %s695_s24, %s2546_s30 }
 0x11e   : > { %p2543_p5 = pnand %p2541_p4, %p3358_p12  ;;  %p2549_p6 = scmp.lt.s32.totalorder %s2547_s27, %s2540_s19 }
 0x120   : > { %p2544_p9 = pneg %p2543_p5  ;;  %p2550_p11 = por %p2549_p6, %p2548_p8 }
 0x122   : > { %p2551_p2 = pnand %p2550_p11, %p2544_p9 }
 0x124   : > { %2554 = shalt.err (!%p2551_p2)
}
 0x125   : > { %p3365_p7 = scmp.ne.s32.totalorder %s3345_s0, 0  ;;  %s3366_s28 = scalar_lea.sflag [#allocation16], %s2786_s18 }
 0x126   : > { %p3367_p13 = scmp.ne.s32.totalorder %s3355_s13, 0 }
 0x127   : > { %2164 = dma.hbm_to_vmem [thread:$0]  (!%p3365_p7), %s3076_s11, 16, %s695_s24, %s3366_s28  }
 0x128   : > { %703 = sbr.rel (%p3367_p13) target bundleno = 3257 (0xcb9), region = 88  ;;  %p3368_p12 = scmp.eq.s32.totalorder (!%p3367_p13), %s2919_s9, 0 }
 0x12f   : > { %2598 = dma.done.wait (%p3368_p12), [#allocation4], 256   ;;  %p3369_p3 = pmov %p3368_p12 }
 0x130   : > { %s709_s17 = sand.u32 1, %s2919_s9   ;;  %s3106_s8 = sand.u32 1, %s2631_s25  }
 0x131   : > { %2600 = vsyncadd (%p3369_p3), [#allocation4], 4294967040  ;;  %s710_s0 = scalar_lea.sflag [#allocation7], %s709_s17  ;;  %s712_s18 = scalar_lea.vmem [#allocation6], %s3106_s8 }
 0x132   : > { %p3370_p11 = scmp.ne.s32.totalorder %s3354_s26, 0 }
 0x134   : > { %2602 = dma.done.wait (%p3370_p11), %s710_s0, 32  }
 0x135   : > { %2604 = vsyncadd (%p3370_p11), %s710_s0, 4294967264  ;;  %s720_s13 = scalar_lea.vmem [#allocation8], %s3106_s8  ;;  %s726_s16 = scalar_lea.sflag [#allocation10], %s709_s17 }
 0x136   : > { %s728_s11 = scalar_lea.vmem [#allocation9], %s3106_s8 }
 0x137   : > { %2606 = dma.done.wait (%p3370_p11), %s726_s16, 32  }
 0x138   : > { %2608 = vsyncadd (%p3370_p11), %s726_s16, 4294967264  ;;  %s742_s24 = scalar_lea.sflag [#allocation13], %s709_s17 }
 0x139   : > { %2610 = dma.done.wait (%p3370_p11), %s742_s24, 32  }
 0x13a   : > { %2612 = vsyncadd (%p3370_p11), %s742_s24, 4294967264  ;;  %s758_s21 = scalar_lea.sflag [#allocation16], %s709_s17 }
 0x13b   : > { %2614 = dma.done.wait (%p3370_p11), %s758_s21, 32  }
 0x13c   : > { %2616 = vsyncadd (%p3370_p11), %s758_s21, 4294967264  ;;  %p3371_p10 = pmov %p3369_p3 }
 0x13d   : > { %p3372_p0 = pmov %p3369_p3 }
 0x13e   : > { %2618 = dma.done.wait (%p3371_p10), [#allocation19], 256  }
 0x13f   : > { %2620 = vsyncadd (%p3372_p0), [#allocation19], 4294967040  ;;  %p865_p1 = scmp.lt.s32.totalorder %s2919_s9, 1  ;;  %s3373_s28 = sld [smem:[#allocation32_spill]] }
 0x140   : > { %s3374_s23 = sld [smem:[#allocation36_spill]]  ;;  %p3375_p4 = scmp.ne.s32.totalorder %s2919_s9, 0 }
 0x141   : > { %s866_s14 = scalar_select %p865_p1, %s2919_s9, 1 }
 0x142   : > { %889 = sbr.rel (%p3375_p4) target bundleno = 329 (0x149), region = 132  ;;  %v890_v0 = vld [vmem:[#allocation3] sm:$0xff] (!%p3375_p4)  ;;  %vm892_vm0 = vcmask (!%p3375_p4), 261120   ;;  %v891_v1 = vld [vmem:[#allocation3 + $0x8] sm:$0xff] (!%p3375_p4) }
 0x143   : > { %s1997_s19 = sshll.u32 %s866_s14, 4  ;;  %s2000_s1 = sshll.u32 %s866_s14, 5  ;;  %893 = vst.msk [vmem:[#allocation2] sm:$0xff] (!%p3375_p4), %vm892_vm0, %v890_v0  ;;  %894 = vst.msk [vmem:[#allocation2 + $0x8] sm:$0xff] (!%p3375_p4), %vm892_vm0, %v891_v1 }
 0x144   : > { %s3144_s16 = scalar_lea.vmem %s3299_s3, %s1997_s19  ;;  %s3149_s2 = scalar_lea.vmem %s3303_s7, %s1997_s19 }
 0x145   : > { %s869_s17 = scalar_lea.vmem %s3373_s28, %s1997_s19 }
 0x146   : > { %s3154_s29 = scalar_lea.vmem %s3374_s23, %s2000_s1 }
 0x149 PF: > { %v2217_v2 = vld [vmem:[%s869_s17] sm:$0xff]   ;;  %v2655_v3 = vmov 0.0   ;;  %v2218_v4 = vld [vmem:[%s869_s17 + $0x8] sm:$0xff]   ;;  %vm2656_vm1 = vmmov 0   ;;  %vm921_vm2 = vcmask 261120   ;;  %s2657_s23 = smov 96  }
 0x14a   : > { %2029 = vmatprep.subr.bf16.mxu0 %v2655_v3  ;;  %2037 = vmatprep.subr.bf16.mxu1 %v2655_v3  ;;  %v3162_v5 = vld [vmem:[#allocation2] sm:$0xff]  ;;  %v3164_v6 = vld [vmem:[#allocation2 + $0x8] sm:$0xff]  ;;  %vm1068_vm3 = vcmask 64512   ;;  %vm1098_vm4 = vcmask 1043456   ;;  %vm1431_vm5 = vcmask 523264   ;;  %s3379_s22 = scalar_lea.vmem [#allocation15], %s3106_s8 }
 0x14b   : > { %2030 = vmatpush3.bf16.msra.mxu0 %v2217_v2  ;;  %2033 = vmatprep.mubr.msk.bf16.mxu0 %vm2656_vm1, %v2655_v3  ;;  %v897_v7 = vpack.c.bf16 %v3164_v6, %v3162_v5  ;;  %v1957_v8 = vld [vmem:[%s712_s18] ss:$0 sm:$0xff]  ;;  %s2658_s18 = smov 64   ;;  %v2220_v56 = vld [vmem:[%s3144_s16 + $0x8] sm:$0xff]   ;;  %s3380_s5 = scalar_lea.vmem [#allocation17], %s3106_s8 }
 0x14c   : > { %2031 = vmatprep.subr.bf16.mxu0 %v2655_v3  ;;  %2039 = vmatprep.mubr.msk.bf16.mxu1 %vm2656_vm1, %v2655_v3  ;;  %v2219_v55 = vld [vmem:[%s3144_s16] sm:$0xff]   ;;  %p1983_p5 = scmp.ne.s32.totalorder %s2919_s9, 1 }
 0x14d   : > { %v1965_v2 = vld [vmem:[%s720_s13] ss:$0 sm:$0xff]  ;;  %s3376_s13 = scalar_lea.vmem [#allocation11], %s3106_s8  ;;  %s3381_s19 = sld [smem:[#allocation38_spill]] (!%p1983_p5)  ;;  %vm2660_vm6 = vmmov (!%p1983_p5), 0   ;;  %vm1546_vm7 = vcmask (!%p1983_p5), 1041409  }
 0x14e   : > { %s3382_s28 = sld [smem:[#allocation39_spill]] (!%p1983_p5)  ;;  %s3383_s0 = sld [smem:[#allocation40_spill]] (!%p1983_p5) }
 0x14f   : > { %2032 = vmatpush3.bf16.msra.mxu0 %v2218_v4 }
 0x150   : > { %2043 = vmatprep.subr.bf16.mxu0 %v2655_v3 }
 0x152   : > { %2034 = vmatmul.mubr.msk.bf16.vlgmr.msra.gmra.mrb[0].mxu0 %vm921_vm2, %v897_v7 }
 0x153   : > { %2045 = vmatprep.mubr.msk.bf16.mxu0 %vm2656_vm1, %v2655_v3 }
 0x225   : > { %v959_v9 = vpop.f32.mrb[0].mxu0 }
 0x226   : > { %v960_v10 = vadd.f32 %v1957_v8, %v959_v9  ;;  %v2035_v11 = vpop.f32.mrb[1].mxu0 }
 0x227   : > { %v962_v12 = vpop.f32.mrb[2].mxu0 }
 0x228   : > { %v966_v13 = vpack.c.bf16 %v960_v10, %v960_v10  ;;  %v963_v14 = vadd.f32 %v1957_v8, %v962_v12  ;;  %v2036_v15 = vpop.f32.mrb[3].mxu0 }
 0x22a   : > { %969 = vrot.lane.b32.xlu0 %v966_v13, %s2657_s23  ;;  %v967_v16 = vpack.c.bf16 %v963_v14, %v963_v14 }
 0x22e   : > { %1018 = vrot.lane.b32.xlu0 %v967_v16, %s2657_s23 }
 0x29c   : > { %v970_v17 = vpop.permute.xlu0 %969 }
 0x29d   : > { %v975_v18 = vsel %vm921_vm2, %v970_v17, 0 }
 0x29e   : > { %2038 = vmatpush3.bf16.xpose.msra.mxu1 %v975_v18 }
 0x29f   : > { %2049 = vmatprep.subr.bf16.mxu1 %v2655_v3 }
 0x2a0   : > { %v1019_v19 = vpop.permute.xlu0 %1018 }
 0x2a1   : > { %v1024_v20 = vsel %vm921_vm2, %v1019_v19, 0 }
 0x2a2   : > { %2044 = vmatpush3.bf16.xpose.msra.mxu0 %v1024_v20 }
 0x2a3   : > { %2055 = vmatprep.subr.bf16.mxu0 %v2655_v3 }
 0x2a5   : > { %2040 = vmatmul.mubr.msk.bf16.vlgmr.msra.gmra.mrb[0].mxu1 %vm921_vm2, %v966_v13 }
 0x2a6   : > { %2051 = vmatprep.mubr.msk.bf16.mxu1 %vm2656_vm1, %v2655_v3 }
 0x2a9   : > { %2046 = vmatmul.mubr.msk.bf16.vlgmr.msra.gmra.mrb[4].mxu0 %vm921_vm2, %v967_v16 }
 0x2aa   : > { %2057 = vmatprep.mubr.msk.bf16.mxu0 %vm2656_vm1, %v2655_v3 }
 0x378   : > { %v1011_v21 = vpop.f32.mrb[0].mxu1 }
 0x379   : > { %v1066_v22 = vmul.f32 0.17677669, %v1011_v21  ;;  %v2041_v23 = vpop.f32.mrb[1].mxu1 }
 0x37a   : > { %v1014_v24 = vpop.f32.mrb[2].mxu1 }
 0x37b   : > { %v2042_v25 = vpop.f32.mrb[3].mxu1  ;;  %v1069_v26 = vsel %vm1068_vm3, %v1066_v22, -inf }
 0x37c   : > { %1070 = vmax.xlane.f32.xlu1 %v1069_v26  ;;  %v1060_v27 = vpop.f32.mrb[4].mxu0  ;;  %v2222_v25 = vld [vmem:[%s3149_s2 + $0x8] sm:$0xff]  }
 0x37d   : > { %v1067_v28 = vmul.f32 0.17677669, %v1060_v27  ;;  %v2047_v29 = vpop.f32.mrb[5].mxu0 }
 0x37e   : > { %v1063_v30 = vpop.f32.mrb[6].mxu0 }
 0x37f   : > { %v2048_v31 = vpop.f32.mrb[7].mxu0  ;;  %v1072_v32 = vsel %vm1068_vm3, %v1067_v28, -inf }
 0x380   : > { %1073 = vmax.xlane.f32.xlu1 %v1072_v32 }
 0x391   : > { %1093 = vrot.lane.b32.xlu1 %v966_v13, %s2658_s18 }
 0x409   : > { %v1071_v33 = vpop.xlane.xlu1 %1070 }
 0x40a   : > { %v1075_v34 = vsub.f32 %v1066_v22, %v1071_v33 }
 0x40c   : > { %v1077_v35 = vmul.f32 1.442695, %v1075_v34  ;;  %v1969_v34 = vld [vmem:[%s728_s11] ss:$0 sm:$0xff]  ;;  %s3377_s11 = scalar_lea.vmem [#allocation12], %s3106_s8 }
 0x40d   : > { %v1074_v36 = vpop.xlane.xlu1 %1073 }
 0x40e   : > { %2227 = vpow2.f32 %v1077_v35  ;;  %v1076_v37 = vsub.f32 %v1067_v28, %v1074_v36 }
 0x410   : > { %v1079_v38 = vmul.f32 1.442695, %v1076_v37 }
 0x411   : > { %v1094_v39 = vpop.permute.xlu1 %1093 }
 0x412   : > { %2229 = vpow2.f32 %v1079_v38  ;;  %v1100_v40 = vsel %vm1098_vm4, %v1094_v39, 0  ;;  %v1970_v38 = vld [vmem:[%s3376_s13] ss:$0 sm:$0xff] }
 0x413   : > { %2050 = vmatpush3.bf16.msra.mxu1 %v1100_v40 }
 0x414   : > { %2061 = vmatprep.subr.bf16.mxu1 %v2655_v3 }
 0x418   : > { %v2228_v41 = vpop.eup %2227 }
 0x419   : > { %v1081_v42 = vsel %vm1068_vm3, %v2228_v41, 0.0 }
 0x41a   : > { %1082 = vadd.xlane.f32.xlu0 %v1081_v42 }
 0x41c   : > { %v2230_v43 = vpop.eup %2229 }
 0x41d   : > { %v1084_v44 = vsel %vm1068_vm3, %v2230_v43, 0.0 }
 0x41e   : > { %1085 = vadd.xlane.f32.xlu1 %v1084_v44  ;;  %v2224_v44 = vld [vmem:[%s3154_s29 + $0x8] sm:$0xff]  }
 0x42f   : > { %1142 = vrot.lane.b32.xlu1 %v967_v16, %s2658_s18 }
 0x4a7   : > { %v1083_v45 = vpop.xlane.xlu0 %1082 }
 0x4a8   : > { %2231 = vrcp.f32 %v1083_v45  ;;  %v2225_v45 = vld [vmem:[%s3154_s29 + $0x10] sm:$0xff]  }
 0x4ab   : > { %v1086_v46 = vpop.xlane.xlu1 %1085 }
 0x4ac   : > { %2233 = vrcp.f32 %v1086_v46  ;;  %v2226_v46 = vld [vmem:[%s3154_s29 + $0x18] sm:$0xff]  }
 0x4af   : > { %v1143_v47 = vpop.permute.xlu1 %1142 }
 0x4b0   : > { %v1148_v48 = vsel %vm1098_vm4, %v1143_v47, 0  ;;  %v1971_v47 = vld [vmem:[%s3377_s11] ss:$0 sm:$0xff] }
 0x4b1   : > { %2056 = vmatpush3.bf16.msra.mxu0 %v1148_v48 }
 0x4b2   : > { %v2232_v49 = vpop.eup %2231  ;;  %2069 = vmatprep.subr.bf16.mxu0 %v2655_v3 }
 0x4b3   : > { %v1089_v50 = vmul.f32 %v2232_v49, %v2228_v41 }
 0x4b5   : > { %v1091_v51 = vpack.c.bf16 %v1089_v50, %v1089_v50 }
 0x4b6   : > { %v2234_v52 = vpop.eup %2233 }
 0x4b7   : > { %v1090_v53 = vmul.f32 %v2234_v52, %v2230_v43  ;;  %2052 = vmatmul.mubr.msk.bf16.vlgmr.msra.gmra.mrb[4].mxu1 %vm1068_vm3, %v1091_v51  ;;  %v2223_v43 = vld [vmem:[%s3154_s29] sm:$0xff]   ;;  %s3378_s29 = scalar_lea.vmem [#allocation14], %s3106_s8 }
 0x4b8   : > { %2065 = vmatprep.mubr.msk.bf16.mxu1 %vm2656_vm1, %v2655_v3  ;;  %2062 = vmatpush3.bf16.msra.mxu1 %v2219_v55 }
 0x4b9   : > { %v1092_v54 = vpack.c.bf16 %v1090_v53, %v1090_v53  ;;  %2063 = vmatprep.subr.bf16.mxu1 %v2655_v3 }
 0x4bb   : > { %2058 = vmatmul.mubr.msk.bf16.vlgmr.msra.gmra.mrb[8].mxu0 %vm1068_vm3, %v1092_v54 }
 0x4bc   : > { %2073 = vmatprep.mubr.msk.bf16.mxu0 %vm2656_vm1, %v2655_v3  ;;  %2064 = vmatpush3.bf16.msra.mxu1 %v2220_v56 }
 0x4bd   : > { %2077 = vmatprep.subr.bf16.mxu1 %v2655_v3 }
 0x58a   : > { %v1136_v57 = vpop.f32.mrb[4].mxu1 }
 0x58b   : > { %v2053_v58 = vpop.f32.mrb[5].mxu1 }
 0x58c   : > { %v1139_v59 = vpop.f32.mrb[6].mxu1 }
 0x58d   : > { %v2054_v60 = vpop.f32.mrb[7].mxu1 }
 0x58e   : > { %v1184_v61 = vpop.f32.mrb[8].mxu0 }
 0x58f   : > { %v1190_v62 = vpack.c.bf16 %v1184_v61, %v1136_v57  ;;  %v2059_v63 = vpop.f32.mrb[9].mxu0 }
 0x590   : > { %v1187_v0 = vpop.f32.mrb[10].mxu0 }
 0x591   : > { %v2060_v1 = vpop.f32.mrb[11].mxu0  ;;  %2066 = vmatmul.mubr.msk.bf16.vlgmr.msra.gmra.mrb[8].mxu1 %vm921_vm2, %v1190_v62 }
 0x592   : > { %2085 = vmatprep.mubr.msk.bf16.mxu1 %vm2656_vm1, %v2655_v3  ;;  %2078 = vmatpush3.bf16.msra.mxu1 %v2223_v43 }
 0x593   : > { %2079 = vmatprep.subr.bf16.mxu1 %v2655_v3 }
 0x596   : > { %2080 = vmatpush3.bf16.msra.mxu1 %v2224_v44 }
 0x597   : > { %2081 = vmatprep.subr.bf16.mxu1 %v2655_v3 }
 0x59a   : > { %2082 = vmatpush3.bf16.msra.mxu1 %v2225_v45 }
 0x59b   : > { %2083 = vmatprep.subr.bf16.mxu1 %v2655_v3 }
 0x59e   : > { %2084 = vmatpush3.bf16.msra.mxu1 %v2226_v46  ;;  %v2247_v46 = vld [vmem:[%s3381_s19] sm:$0xff] (!%p1983_p5)  }
 0x664   : > { %v1251_v4 = vpop.f32.mrb[8].mxu1 }
 0x665   : > { %v1252_v7 = vadd.f32 %v1965_v2, %v1251_v4  ;;  %v2067_v8 = vpop.f32.mrb[9].mxu1 }
 0x666   : > { %v1254_v9 = vpop.f32.mrb[10].mxu1 }
 0x667   : > { %v1255_v10 = vadd.f32 %v1965_v2, %v1254_v9  ;;  %v2068_v11 = vpop.f32.mrb[11].mxu1  ;;  %v1258_v12 = vadd.f32 %v1252_v7, %v3162_v5 }
 0x668   : > { %v1975_v11 = vld [vmem:[%s3378_s29] ss:$0 sm:$0xff] }
 0x669   : > { %v1262_v13 = vsel %vm921_vm2, %v1258_v12, 0.0  ;;  %v1259_v14 = vadd.f32 %v1255_v10, %v3164_v6  ;;  %v2221_v6 = vld [vmem:[%s3149_s2] sm:$0xff]  }
 0x66a   : > { %1263 = vadd.xlane.f32.xlu1 %v1262_v13  ;;  %2070 = vmatpush3.bf16.msra.mxu0 %v2221_v6 }
 0x66b   : > { %v1265_v15 = vsel %vm921_vm2, %v1259_v14, 0.0  ;;  %2071 = vmatprep.subr.bf16.mxu0 %v2655_v3 }
 0x66c   : > { %1266 = vadd.xlane.f32.xlu0 %v1265_v15 }
 0x66e   : > { %2072 = vmatpush3.bf16.msra.mxu0 %v2222_v25 }
 0x6f7   : > { %v1264_v16 = vpop.xlane.xlu1 %1263 }
 0x6f8   : > { %v1269_v17 = vmul.f32 0.03125, %v1264_v16 }
 0x6f9   : > { %v1267_v18 = vpop.xlane.xlu0 %1266 }
 0x6fa   : > { %v1271_v19 = vsub.f32 %v1258_v12, %v1269_v17  ;;  %v1270_v20 = vmul.f32 0.03125, %v1267_v18 }
 0x6fc   : > { %v1272_v21 = vsub.f32 %v1259_v14, %v1270_v20  ;;  %v1273_v22 = vmul.f32 %v1271_v19, %v1271_v19 }
 0x6fe   : > { %v1275_v23 = vsel %vm921_vm2, %v1273_v22, 0.0  ;;  %v1274_v5 = vmul.f32 %v1272_v21, %v1272_v21 }
 0x6ff   : > { %1276 = vadd.xlane.f32.xlu0 %v1275_v23 }
 0x700   : > { %v1278_v24 = vsel %vm921_vm2, %v1274_v5, 0.0 }
 0x703   : > { %1279 = vadd.xlane.f32.xlu0 %v1278_v24 }
 0x78c   : > { %v1277_v26 = vpop.xlane.xlu0 %1276 }
 0x78d   : > { %v1281_v27 = vmul.f32 0.03125, %v1277_v26 }
 0x78f   : > { %v1283_v28 = vadd.f32 1e-12, %v1281_v27 }
 0x790   : > { %v1280_v29 = vpop.xlane.xlu0 %1279 }
 0x791   : > { %2235 = vrsqrt.f32 %v1283_v28  ;;  %v1282_v30 = vmul.f32 0.03125, %v1280_v29 }
 0x793   : > { %v1284_v31 = vadd.f32 1e-12, %v1282_v30 }
 0x795   : > { %2237 = vrsqrt.f32 %v1284_v31 }
 0x79b   : > { %v2236_v32 = vpop.eup %2235 }
 0x79c   : > { %v1287_v33 = vmul.f32 %v2236_v32, %v1271_v19 }
 0x79e   : > { %v1295_v36 = vmul.f32 %v1969_v34, %v1287_v33 }
 0x79f   : > { %v2238_v35 = vpop.eup %2237 }
 0x7a0   : > { %v1288_v37 = vmul.f32 %v2238_v35, %v1272_v21  ;;  %v1303_v40 = vadd.f32 %v1970_v38, %v1295_v36 }
 0x7a2   : > { %v1296_v39 = vmul.f32 %v1969_v34, %v1288_v37  ;;  %v1981_v37 = vld [vmem:[%s3379_s22] ss:$0 sm:$0xff] }
 0x7a4   : > { %v1304_v41 = vadd.f32 %v1970_v38, %v1296_v39  ;;  %v1982_v39 = vld [vmem:[%s3380_s5] ss:$0 sm:$0xff] }
 0x7a6   : > { %v1305_v42 = vpack.c.bf16 %v1304_v41, %v1303_v40 }
 0x7a8   : > { %2074 = vmatmul.mubr.msk.bf16.vlgmr.msra.gmra.mrb[12].mxu0 %vm921_vm2, %v1305_v42 }
 0x87b   : > { %v1366_v48 = vpop.f32.mrb[12].mxu0 }
 0x87c   : > { %v1367_v49 = vadd.f32 %v1971_v47, %v1366_v48  ;;  %v2075_v50 = vpop.f32.mrb[13].mxu0 }
 0x87d   : > { %v1369_v51 = vpop.f32.mrb[14].mxu0  ;;  %v2248_v50 = vld [vmem:[%s3381_s19 + $0x8] sm:$0xff] (!%p1983_p5)  }
 0x87e   : > { %v1373_v52 = vmul.f32 %v1367_v49, %v1367_v49  ;;  %v1370_v53 = vadd.f32 %v1971_v47, %v1369_v51  ;;  %v2076_v54 = vpop.f32.mrb[15].mxu0 }
 0x880   : > { %v1375_v55 = vmul.f32 %v1373_v52, %v1367_v49  ;;  %v1374_v56 = vmul.f32 %v1370_v53, %v1370_v53 }
 0x882   : > { %v1377_v57 = vmul.f32 0.044715, %v1375_v55  ;;  %v1376_v58 = vmul.f32 %v1374_v56, %v1370_v53  ;;  %v2249_v56 = vld [vmem:[#allocation18] sm:$0xff] (!%p1983_p5)  }
 0x884   : > { %v1379_v59 = vadd.f32 %v1377_v57, %v1367_v49  ;;  %v1378_v60 = vmul.f32 0.044715, %v1376_v58  ;;  %v2250_v57 = vld [vmem:[#allocation18 + $0x8] sm:$0xff] (!%p1983_p5)   ;;  %v1984_v58 = vld [vmem:[%s3382_s28] ss:$0 sm:$0xff] (!%p1983_p5) }
 0x886   : > { %v1381_v61 = vmul.f32 0.7978846, %v1379_v59  ;;  %v1380_v3 = vadd.f32 %v1378_v60, %v1370_v53 }
 0x888   : > { %2239 = vtanh.f32 %v1381_v61  ;;  %v1382_v62 = vmul.f32 0.7978846, %v1380_v3 }
 0x88a   : > { %2241 = vtanh.f32 %v1382_v62 }
 0x892   : > { %v2240_v63 = vpop.eup %2239 }
 0x893   : > { %v1385_v0 = vadd.f32 1.0, %v2240_v63 }
 0x894   : > { %v2242_v1 = vpop.eup %2241 }
 0x895   : > { %v1387_v2 = vmul.f32 0.5, %v1385_v0  ;;  %v1386_v4 = vadd.f32 1.0, %v2242_v1 }
 0x897   : > { %v1388_v7 = vmul.f32 0.5, %v1386_v4  ;;  %v1389_v8 = vmul.f32 %v1387_v2, %v1367_v49  ;;  %v2659_v49 = vmov (!%p1983_p5), 0.0   ;;  %v1988_v2 = vld [vmem:[%s3383_s0] ss:$0 sm:$0xff] (!%p1983_p5) }
 0x898   : > { %2089 = vmatprep.subr.bf16.mxu0 (!%p1983_p5), %v2659_v49  ;;  %2097 = vmatprep.subr.bf16.mxu1 (!%p1983_p5), %v2659_v49 }
 0x899   : > { %v1390_v9 = vmul.f32 %v1388_v7, %v1370_v53  ;;  %2090 = vmatpush3.bf16.msra.mxu0 (!%p1983_p5), %v2247_v46  ;;  %2093 = vmatprep.mubr.msk.bf16.mxu0 (!%p1983_p5), %vm2660_vm6, %v2659_v49 }
 0x89a   : > { %2091 = vmatprep.subr.bf16.mxu0 (!%p1983_p5), %v2659_v49 }
 0x89b   : > { %v1391_v10 = vpack.c.bf16 %v1390_v9, %v1389_v8 }
 0x89d   : > { %2086 = vmatmul.mubr.msk.bf16.vlgmr.msra.gmra.mrb[12].mxu1 %vm1431_vm5, %v1391_v10  ;;  %2092 = vmatpush3.bf16.msra.mxu0 (!%p1983_p5), %v2248_v50 }
 0x89e   : > { %2101 = vmatprep.mubr.msk.bf16.mxu1 (!%p1983_p5), %vm2660_vm6, %v2659_v49  ;;  %2098 = vmatpush3.bf16.msra.mxu1 (!%p1983_p5), %v2249_v56 }
 0x89f   : > { %2099 = vmatprep.subr.bf16.mxu1 (!%p1983_p5), %v2659_v49 }
 0x8a2   : > { %2100 = vmatpush3.bf16.msra.mxu1 (!%p1983_p5), %v2250_v57 }
 0x970   : > { %v1469_v12 = vpop.f32.mrb[12].mxu1 }
 0x971   : > { %v1470_v13 = vadd.f32 %v1975_v11, %v1469_v12  ;;  %v2087_v14 = vpop.f32.mrb[13].mxu1 }
 0x972   : > { %v1472_v15 = vpop.f32.mrb[14].mxu1 }
 0x973   : > { %v1473_v16 = vadd.f32 %v1975_v11, %v1472_v15  ;;  %v2088_v17 = vpop.f32.mrb[15].mxu1  ;;  %v1476_v18 = vadd.f32 %v1470_v13, %v1303_v40 }
 0x975   : > { %v1480_v19 = vsel %vm921_vm2, %v1476_v18, 0.0  ;;  %v1477_v20 = vadd.f32 %v1473_v16, %v1304_v41 }
 0x976   : > { %1481 = vadd.xlane.f32.xlu0 %v1480_v19 }
 0x977   : > { %v1483_v21 = vsel %vm921_vm2, %v1477_v20, 0.0 }
 0x97a   : > { %1484 = vadd.xlane.f32.xlu0 %v1483_v21 }
 0xa03   : > { %v1482_v22 = vpop.xlane.xlu0 %1481 }
 0xa04   : > { %v1486_v23 = vmul.f32 0.03125, %v1482_v22 }
 0xa06   : > { %v1488_v5 = vsub.f32 %v1476_v18, %v1486_v23 }
 0xa07   : > { %v1485_v24 = vpop.xlane.xlu0 %1484 }
 0xa08   : > { %v1487_v6 = vmul.f32 0.03125, %v1485_v24  ;;  %v1490_v25 = vmul.f32 %v1488_v5, %v1488_v5 }
 0xa0a   : > { %v1489_v26 = vsub.f32 %v1477_v20, %v1487_v6  ;;  %v1492_v27 = vsel %vm921_vm2, %v1490_v25, 0.0 }
 0xa0b   : > { %1493 = vadd.xlane.f32.xlu0 %v1492_v27 }
 0xa0c   : > { %v1491_v28 = vmul.f32 %v1489_v26, %v1489_v26 }
 0xa0e   : > { %v1495_v29 = vsel %vm921_vm2, %v1491_v28, 0.0 }
 0xa0f   : > { %1496 = vadd.xlane.f32.xlu0 %v1495_v29 }
 0xa98   : > { %v1494_v30 = vpop.xlane.xlu0 %1493 }
 0xa99   : > { %v1498_v31 = vmul.f32 0.03125, %v1494_v30 }
 0xa9b   : > { %v1500_v32 = vadd.f32 1e-12, %v1498_v31 }
 0xa9c   : > { %v1497_v33 = vpop.xlane.xlu0 %1496 }
 0xa9d   : > { %2243 = vrsqrt.f32 %v1500_v32  ;;  %v1499_v34 = vmul.f32 0.03125, %v1497_v33 }
 0xa9f   : > { %v1501_v35 = vadd.f32 1e-12, %v1499_v34 }
 0xaa1   : > { %2245 = vrsqrt.f32 %v1501_v35 }
 0xaa7   : > { %v2244_v36 = vpop.eup %2243 }
 0xaa8   : > { %v1504_v38 = vmul.f32 %v2244_v36, %v1488_v5 }
 0xaaa   : > { %v1512_v40 = vmul.f32 %v1981_v37, %v1504_v38 }
 0xaab   : > { %v2246_v41 = vpop.eup %2245 }
 0xaac   : > { %v1520_v42 = vadd.f32 %v1982_v39, %v1512_v40  ;;  %v1505_v43 = vmul.f32 %v2246_v41, %v1489_v26  ;;  %1527 = sbr.rel (%p1983_p5) target bundleno = 3226 (0xc9a), region = 136 }
 0xaae   : > { %1522 = vst.msk [vmem:[#allocation2] sm:$0xff] %vm921_vm2, %v1520_v42  ;;  %v1513_v44 = vmul.f32 %v1981_v37, %v1505_v43  ;;  %v1528_v47 = vpack.c.bf16 (!%p1983_p5), %v1520_v42, %v1520_v42 }
 0xab0   : > { %v1521_v45 = vadd.f32 %v1982_v39, %v1513_v44  ;;  %v1543_v51 = vunpack.c.l.b16 (!%p1983_p5), %v1528_v47 }
 0xab2   : > { %1523 = vst.msk [vmem:[#allocation2 + $0x8] sm:$0xff] %vm921_vm2, %v1521_v45  ;;  %v1529_v48 = vpack.c.bf16 (!%p1983_p5), %v1521_v45, %v1521_v45 }
 0xab4   : > { %v1544_v52 = vunpack.c.l.b16 %v1529_v48 }
 0xab6   : > { %v1545_v53 = vrot.slane %v1544_v52, 7 }
 0xab8   : > { %v1547_v54 = vsel %vm1546_vm7, %v1545_v53, %v1543_v51 }
 0xab9   : > { %v1548_v55 = vpack.c.b16 %v1547_v54, %v1547_v54 }
 0xabb   : > { %2094 = vmatmul.mubr.msk.bf16.vlgmr.msra.gmra.mrb[0].mxu0 %vm921_vm2, %v1548_v55 }
 0xb8e   : > { %v1598_v59 = vpop.f32.mrb[0].mxu0 }
 0xb8f   : > { %v1599_v60 = vadd.f32 %v1984_v58, %v1598_v59  ;;  %v2095_v61 = vpop.f32.mrb[1].mxu0 }
 0xb90   : > { %v1601_v3 = vpop.f32.mrb[2].mxu0 }
 0xb91   : > { %2251 = vtanh.f32 %v1599_v60  ;;  %v2096_v62 = vpop.f32.mrb[3].mxu0 }
 0xb9b   : > { %v2252_v63 = vpop.eup %2251 }
 0xb9c   : > { %2253 = vtanh.f32 %v2252_v63 }
 0xba6   : > { %v2254_v0 = vpop.eup %2253 }
 0xba7   : > { %v1606_v1 = vpack.c.bf16 %v2254_v0, %v2254_v0 }
 0xba9   : > { %2102 = vmatmul.mubr.msk.bf16.vlgmr.msra.gmra.mrb[0].mxu1 %vm921_vm2, %v1606_v1 }
 0xc7c   : > { %v1667_v4 = vpop.f32.mrb[0].mxu1 }
 0xc7d   : > { %v1668_v7 = vadd.f32 %v1988_v2, %v1667_v4  ;;  %v2103_v8 = vpop.f32.mrb[1].mxu1 }
 0xc7e   : > { %v1670_v9 = vpop.f32.mrb[2].mxu1 }
 0xc7f   : > { %v1992_v10 = vmul.f32 -1.442695, %v1668_v7  ;;  %v2104_v11 = vpop.f32.mrb[3].mxu1 }
 0xc81   : > { %2255 = vpow2.f32 %v1992_v10 }
 0xc8b   : > { %v2256_v12 = vpop.eup %2255 }
 0xc8c   : > { %v1676_v13 = vadd.f32 1.0, %v2256_v12 }
 0xc8e   : > { %2257 = vrcp.f32 %v1676_v13 }
 0xc98   : > { %v2258_v14 = vpop.eup %2257 }
 0xc99   : > { %1679 = vst [vmem:[#allocation20] sm:$0x3] %v2258_v14 }
 0xc9a PF: > { %p2170_p9 = scmp.eq.s32.totalorder %s2919_s9, 1  ;;  %s2661_s16 = smov [#allocation20]  }
 0xc9b   : > { %s1687_s24 = sshll.u32 %s2661_s16, 4  ;;  %s1688_s24 = int_to_ptr.vmem [resolvable:$true] %s1687_s24 }
 0xc9c   : > { %s2555_s21 = scalar_lea.vmem %s1688_s24, 32  ;;  %p2562_p7 = scmp.lt.s32.totalorder %s1688_s24, %s1688_s24 }
 0xc9d   : > { %p2556_p8 = scmp.ne.s32.totalorder %s1688_s24, %s2555_s21  ;;  %p2563_p13 = scmp.lt.s32.totalorder %s2555_s21, %s2555_s21 }
 0xc9f   : > { %p2557_p6 = pnand %p2556_p8, %p2170_p9  ;;  %p2564_p12 = por %p2563_p13, %p2562_p7 }
 0xca1   : > { %p2558_p2 = pneg %p2557_p6 }
 0xca3   : > { %p2565_p3 = pnand %p2564_p12, %p2558_p2 }
 0xca5   : > { %2568 = shalt.err (!%p2565_p3)
}
 0xca6   : > { %s3384_s13 = sld [smem:[#allocation41_spill]] }
 0xcac   : > { %s2569_s11 = scalar_lea.hbm %s3384_s13, 32 }
 0xcad   : > { %p2570_p11 = scmp.ne.s32.totalorder %s3384_s13, %s2569_s11  ;;  %p2575_p1 = scmp.lt.u32.totalorder %s2569_s11, %s3384_s13 }
 0xcaf   : > { %p2571_p10 = pnand %p2570_p11, %p2170_p9 }
 0xcb1   : > { %p2572_p0 = pneg %p2571_p10 }
 0xcb3   : > { %p2577_p4 = pnand %p2575_p1, %p2572_p0 }
 0xcb5   : > { %2580 = shalt.err (!%p2577_p4)
}
 0xcb6   : > { %2130 = dma.vmem_to_hbm [thread:$0]  (%p2170_p9), %s1688_s24, 32, %s3384_s13, [#allocation5]  }
 0xcb7   : > { %2622 = dma.done.wait (%p2170_p9), [#allocation5], 32  }
 0xcb8   : > { %2624 = vsyncadd (%p2170_p9), [#allocation5], 4294967264 }
 0xcb9 PF: > { %s3385_s27 = sld [smem:[#allocation29_spill]]  ;;  %s3386_s1 = sld [smem:[#allocation28_spill]] }
 0xcba   : > { %s3387_s26 = sld [smem:[#allocation30_spill]]  ;;  %s3388_s24 = smov %s2631_s25 }
 0xcbf   : > { %p39_p5 = scmp.ge.s32.totalorder %s3385_s27, 4   ;;  %s3389_s25 = smov %s3386_s1 }
 0xcc1   :  { %41 = sbr.rel (!%p39_p5) target bundleno = 24 (0x18), region = 237 }
 0xcc8   :  { %1700 = vsyncpa [#allocation4], 1 }
 0xcc9   :  { %1702 = vsyncpa [#allocation4 + $0x1], 1 }
 0xcca   :  { %1703 = vsyncpa [#allocation7], 1 }
 0xccb   :  { %1705 = vsyncpa [#allocation7 + $0x1], 1 }
 0xccc   :  { %1706 = vsyncpa [#allocation10], 1 }
 0xccd   :  { %1708 = vsyncpa [#allocation10 + $0x1], 1 }
 0xcce   :  { %1709 = vsyncpa [#allocation13], 1 }
 0xccf   :  { %1711 = vsyncpa [#allocation13 + $0x1], 1 }
 0xcd0   :  { %1712 = vsyncpa [#allocation16], 1 }
 0xcd1   :  { %1714 = vsyncpa [#allocation16 + $0x1], 1 }
 0xcd2   :  { %1715 = vsyncpa [#allocation19], 1 }
 0xcd3   :  { %1716 = vsyncpa [#allocation5], 1 }
 0xcd4   :  { %1718 = vsyncpa [#allocation5 + $0x1], 1 }

</bundles_post_ra>
